<compile_context>
chip_gen: v7x
topology: tpu7x:2x2x1
jax: 0.10.0
libtpu: 0.0.40
codegen_flags: <defaults>
</compile_context>

<pallas_src>
import functools

import jax
import jax.numpy as jnp
import numpy as np
from jax import lax
from jax.experimental import pallas as pl
from jax.experimental.pallas import tpu as pltpu


# ----------------------------- Pallas kernel -------------------------------- #
def attention_kernel(x_ref, sx_ref,
                     wq_ref, bq_ref, wk_ref, bk_ref, wv_ref, bv_ref,
                     wp_ref, bp_ref,
                     o_ref,
                     k_scr, v_scr,
                     *, num_heads, key_dim, d, fast_math):
    """grid = (B, num_query_tiles); channels-major (spatial on lanes).

    k_scr : (num_heads, key_dim, N) bf16   keys, computed once per batch element
    v_scr : (num_heads, d + 1,  N)  bf16   values; row d holds ones so a single
                                           PV matmul also yields the softmax denom.
    """
    f32, bf16 = jnp.float32, jnp.bfloat16
    qidx = pl.program_id(1)

    # ---- K / V projection hoisted out of the query-tile loop: computed only for
    #      the first query tile of each batch element, reused by all the others.
    @pl.when(qidx == 0)
    def _():
        x = x_ref[0]                                                   # (dim, N) bf16
        N = x.shape[-1]
        k = (jnp.dot(wk_ref[...], x, preferred_element_type=f32)
             + bk_ref[...]).astype(bf16)                               # (nh*kd, N)
        v = (jnp.dot(wv_ref[...], x, preferred_element_type=f32)
             + bv_ref[...]).astype(bf16)                               # (nh*d,  N)
        ones = jnp.ones((1, N), dtype=bf16)
        for h in range(num_heads):                                     # static unroll
            k_scr[h] = k[h * key_dim:(h + 1) * key_dim, :]
            v_scr[h, 0:d, :] = v[h * d:(h + 1) * d, :]
            v_scr[h, d:d + 1, :] = ones                                # softmax-denominator row

    # ---- Q projection for this query tile (all heads fused in one matmul). ----
    sx = sx_ref[0]                                                     # (dim_s, tq) bf16
    q = (jnp.dot(wq_ref[...], sx, preferred_element_type=f32)
         + bq_ref[...]).astype(bf16)                                   # (nh*kd, tq)

    acc = None
    # TODO(synk): for num_heads >= 4 on v7x (64 MiB VMEM) convert this static unroll
    # into a lax.fori_loop over heads so only one head's (tq, N) logits stay live.
    for h in range(num_heads):
        qh = q[h * key_dim:(h + 1) * key_dim, :]                       # (kd, tq)
        kh = k_scr[h]                                                  # (kd, N)
        vh = v_scr[h]                                                  # (d+1, N)

        # attn logits (tq, N); no 1/sqrt(kd) scale — self.scale is unused in the
        # PyTorch forward, so this matches the reference exactly.
        s = lax.dot_general(qh, kh, (((0,), (0,)), ((), ())),
                            preferred_element_type=f32)
        s = s - jnp.max(s, axis=-1, keepdims=True)
        if fast_math:
            p = jnp.exp(s.astype(bf16))          # bf16 EUP exp (v6e/v7x ~2x f32 rate)
        else:
            p = jnp.exp(s).astype(bf16)          # exact-ish path (validation / v5e)

        # single PV matmul also produces the softmax denominator (ones row of vh)
        pv = lax.dot_general(vh, p, (((1,), (1,)), ((), ())),
                             preferred_element_type=f32)               # (d+1, tq)
        xx = pv[0:d, :]
        rs = pv[d:d + 1, :]
        xx = xx * pl.reciprocal(rs, approx=fast_math)                  # deferred softmax denom
        xx = jnp.maximum(xx, 0.0).astype(bf16)                         # proj activation (ReLU)

        # accumulate the output projection head-by-head: no in-kernel concat and
        # each head's buffers go dead as soon as its contribution is added.
        contrib = jnp.dot(wp_ref[h], xx, preferred_element_type=f32)   # (dim_s, tq)
        acc = contrib if acc is None else acc + contrib

    o_ref[0] = (acc + bp_ref[...]).astype(o_ref.dtype)


# --------------------------- tiling / VMEM heuristics ------------------------ #
def _round_up(n, m):
    return ((n + m - 1) // m) * m


def _tpu_vmem_capacity_bytes():
    try:
        return int(pltpu.get_tpu_info().vmem_capacity_bytes)
    except Exception:
        return 64 * 1024 * 1024  # conservative fallback: v7x per-TensorCore VMEM


def _vmem_step_bytes(tq, N, num_heads, key_dim, d, dim, dim_s):
    """Rough per-grid-step VMEM footprint in bytes."""
    logits = tq * N * (4 + 2)                              # f32 s + bf16 p (one head)
    heads_live = 2                                         # unroll may keep ~2 heads live
    kv_scr = num_heads * (key_dim + d + 1) * N * 2         # bf16 K/V scratch
    x_blk = dim * N * 2                                    # x block (bf16, not re-DMAd over q)
    sx_blk = 2 * dim_s * tq * 2                            # double-buffered bf16
    out_blk = 2 * dim_s * tq * 4                           # double-buffered f32
    weights = 2 * num_heads * (key_dim + d) * (dim + dim_s)
    return heads_live * logits + kv_scr + x_blk + sx_blk + out_blk + weights


def _choose_query_tile(Ns_pad, N, B, num_heads, key_dim, d, dim, dim_s, budget):
    """Largest 128-multiple query tile whose working set fits the VMEM budget."""
    tq = 128
    for cand in (1024, 512, 256):
        if Ns_pad % cand == 0 and _vmem_step_bytes(
                cand, N, num_heads, key_dim, d, dim, dim_s) <= budget:
            tq = cand
            break
    # Megacore (v7x: 2 TCs): prefer >= ~2 grid steps per core so sx/out tiles pipeline.
    while tq > 128 and B * (Ns_pad // tq) < 4:
        tq //= 2
    return tq


# ------------------------------- wrapper ------------------------------------ #
def attention_pallas(x_nchw, sx_nchw, kparams, *, num_heads, key_dim, attn_ratio,
                     fast_math=True, out_dtype=jnp.float32):
    # out_dtype=jnp.bfloat16 halves HBM writeback (worth it on v5e / bf16 consumers).
    B, dim, H, W = x_nchw.shape
    _, dim_s, Hs, Ws = sx_nchw.shape
    N, Ns = H * W, Hs * Ws
    assert N == Ns, "forward semantics require H*W == Hs*Ws"
    d = int(attn_ratio * key_dim)

    # channels-major, spatial on lanes; bf16 activations (f32 MXU accumulation).
    x_cm = x_nchw.reshape(B, dim, N).astype(jnp.bfloat16)       # (B, dim,   N)
    sx_cm = sx_nchw.reshape(B, dim_s, Ns).astype(jnp.bfloat16)  # (B, dim_s, Ns)

    # Pad the *query* axis to a multiple of 128: lane-dense output stores and
    # unpadded MXU tiles.  Padded queries are throwaway rows sliced off below;
    # the key/softmax axis is untouched so no masking is needed.
    Ns_pad = _round_up(Ns, 128)
    if Ns_pad != Ns:
        sx_cm = jnp.pad(sx_cm, ((0, 0), (0, 0), (0, Ns_pad - Ns)))

    capacity = _tpu_vmem_capacity_bytes()
    budget = capacity // 3                       # headroom for compiler scratch etc.
    tq = _choose_query_tile(Ns_pad, N, B, num_heads, key_dim, d, dim, dim_s, budget)
    nq = Ns_pad // tq
    est = _vmem_step_bytes(tq, N, num_heads, key_dim, d, dim, dim_s)
    vmem_limit = int(min(capacity * 3 // 4, max(32 * 1024 * 1024, 2 * est)))
    # TODO(synk): for very large N (>= ~4096) also tile the key axis with an online
    # (flash) softmax so the (tq, N) logits tile never materializes.

    wq, bq, wk, bk, wv, bv, wp, bp = kparams

    kernel = functools.partial(attention_kernel, num_heads=num_heads,
                               key_dim=key_dim, d=d, fast_math=fast_math)

    out_cm = pl.pallas_call(
        kernel,
        out_shape=jax.ShapeDtypeStruct((B, dim_s, Ns_pad), out_dtype),
        grid_spec=pltpu.PrefetchScalarGridSpec(
            num_scalar_prefetch=0,
            grid=(B, nq),
            in_specs=[
                pl.BlockSpec((1, dim, N),    lambda b, q: (b, 0, 0)),   # x (keys/values src)
                pl.BlockSpec((1, dim_s, tq), lambda b, q: (b, 0, q)),   # sx (query tile)
                pl.BlockSpec(wq.shape,       lambda b, q: (0, 0)),      # Wq (all heads)
                pl.BlockSpec(bq.shape,       lambda b, q: (0, 0)),      # bq
                pl.BlockSpec(wk.shape,       lambda b, q: (0, 0)),      # Wk
                pl.BlockSpec(bk.shape,       lambda b, q: (0, 0)),      # bk
                pl.BlockSpec(wv.shape,       lambda b, q: (0, 0)),      # Wv
                pl.BlockSpec(bv.shape,       lambda b, q: (0, 0)),      # bv
                pl.BlockSpec(wp.shape,       lambda b, q: (0, 0, 0)),   # Wproj (nh, dim_s, d)
                pl.BlockSpec(bp.shape,       lambda b, q: (0, 0)),      # bproj
            ],
            out_specs=pl.BlockSpec((1, dim_s, tq), lambda b, q: (b, 0, q)),
            scratch_shapes=[
                pltpu.VMEM((num_heads, key_dim, N), jnp.bfloat16),      # K scratch
                pltpu.VMEM((num_heads, d + 1, N), jnp.bfloat16),        # V scratch (+ones row)
            ]),
        compiler_params=pltpu.CompilerParams(
            # batch axis "parallel" (megacore); query axis "arbitrary" because the
            # K/V scratch is carried across query tiles of the same batch element.
            dimension_semantics=("parallel", "arbitrary"),
            vmem_limit_bytes=vmem_limit),
    )(x_cm, sx_cm, wq, bq, wk, bk, wv, bv, wp, bp)

    out_cm = out_cm[:, :, :Ns]                  # drop padded queries
    return out_cm.reshape(B, dim_s, H, W)       # channels-major -> NCHW is a pure reshape


# --------------------------- parameter handling ------------------------------ #
def fold_bn(W, gamma, beta, mean, var, eps=1e-5):
    """Fold inference-mode BatchNorm into a bias-free 1x1 conv weight (Cout, Cin)."""
    s = gamma / jnp.sqrt(var + eps)
    return W * s[:, None], beta - mean * s


def build_kernel_params(raw, *, num_heads, key_dim, attn_ratio, dim, dim_s):
    d = int(attn_ratio * key_dim)
    dh = d * num_heads
    nh_kd = key_dim * num_heads

    Wq_e, bq_e = fold_bn(raw["Wq"], *raw["bn_q"])
    Wk_e, bk_e = fold_bn(raw["Wk"], *raw["bn_k"])
    Wv_e, bv_e = fold_bn(raw["Wv"], *raw["bn_v"])
    Wp_e, bp_e = fold_bn(raw["Wp"], *raw["bn_p"])

    # proj weight pre-split per head: (dim_s, dh) -> (num_heads, dim_s, d), so the
    # kernel accumulates the projection head-by-head (no in-kernel concat).
    Wp_h = jnp.transpose(Wp_e.reshape(dim_s, num_heads, d), (1, 0, 2))

    # Channels-major kernel computes out = W @ in; weights bf16, biases f32 columns.
    return (Wq_e.astype(jnp.bfloat16), bq_e.reshape(nh_kd, 1).astype(jnp.float32),
            Wk_e.astype(jnp.bfloat16), bk_e.reshape(nh_kd, 1).astype(jnp.float32),
            Wv_e.astype(jnp.bfloat16), bv_e.reshape(dh, 1).astype(jnp.float32),
            Wp_h.astype(jnp.bfloat16), bp_e.reshape(dim_s, 1).astype(jnp.float32))


# ----------------------- pure-JAX reference (PyTorch mirror) ----------------- #
def conv_bn_ref(inp, W, gamma, beta, mean, var, eps=1e-5):
    y = jnp.einsum("bchw,oc->bohw", inp, W)
    inv = gamma / jnp.sqrt(var + eps)
    return (y - mean[None, :, None, None]) * inv[None, :, None, None] + beta[None, :, None, None]


def attention_ref(x, sx, raw, *, num_heads, key_dim, attn_ratio):
    B, C, H, W = x.shape
    _, C_s, Hs, Ws = sx.shape
    d = int(attn_ratio * key_dim)
    dh = d * num_heads
    q = conv_bn_ref(sx, raw["Wq"], *raw["bn_q"])
    k = conv_bn_ref(x, raw["Wk"], *raw["bn_k"])
    v = conv_bn_ref(x, raw["Wv"], *raw["bn_v"])
    qq = jnp.transpose(q.reshape(B, num_heads, key_dim, Hs * Ws), (0, 1, 3, 2))
    kk = k.reshape(B, num_heads, key_dim, H * W)
    vv = jnp.transpose(v.reshape(B, num_heads, d, Hs * Ws), (0, 1, 3, 2))
    attn = jnp.matmul(qq, kk)
    attn = jax.nn.softmax(attn, axis=-1)
    xx = jnp.matmul(attn, vv)
    xx = jnp.transpose(xx, (0, 1, 3, 2)).reshape(B, dh, H, W)
    xx = jnp.maximum(xx, 0.0)  # activation = ReLU
    return conv_bn_ref(xx, raw["Wp"], *raw["bn_p"])


# ---------------------------------- main ------------------------------------- #
if __name__ == "__main__":
    # module hyper-params (small but consistent with the module)
    dim, dim_s, key_dim, num_heads, attn_ratio = 8, 8, 8, 2, 4
    d = int(attn_ratio * key_dim)
    nh_kd, dh = key_dim * num_heads, d * num_heads
    B, H, W = 2, 8, 8
    Hs, Ws = 8, 8

    key = jax.random.PRNGKey(0)
    ks = jax.random.split(key, 24)

    def bn_params(k0, k1, k2, k3, c):
        return (jax.random.uniform(k0, (c,), minval=0.5, maxval=1.5),   # gamma
                jax.random.normal(k1, (c,)) * 0.1,                      # beta
                jax.random.normal(k2, (c,)) * 0.1,                      # running mean
                jax.random.uniform(k3, (c,), minval=0.5, maxval=1.5))   # running var

    raw = {
        "Wq": jax.random.normal(ks[0], (nh_kd, dim_s), jnp.float32) * 0.2,
        "Wk": jax.random.normal(ks[1], (nh_kd, dim), jnp.float32) * 0.2,
        "Wv": jax.random.normal(ks[2], (dh, dim), jnp.float32) * 0.2,
        "Wp": jax.random.normal(ks[3], (dim_s, dh), jnp.float32) * 0.2,
        "bn_q": bn_params(ks[4], ks[5], ks[6], ks[7], nh_kd),
        "bn_k": bn_params(ks[8], ks[9], ks[10], ks[11], nh_kd),
        "bn_v": bn_params(ks[12], ks[13], ks[14], ks[15], dh),
        "bn_p": bn_params(ks[16], ks[17], ks[18], ks[19], dim_s),
    }

    x = jax.random.normal(ks[20], (B, dim, H, W), jnp.float32)
    singlex = jax.random.normal(ks[21], (B, dim_s, Hs, Ws), jnp.float32)

    kparams = build_kernel_params(raw, num_heads=num_heads, key_dim=key_dim,
                                  attn_ratio=attn_ratio, dim=dim, dim_s=dim_s)

    # exact-math path (f32 exp, exact reciprocal): tight-ish check of the structure.
    out_exact = attention_pallas(x, singlex, kparams, num_heads=num_heads,
                                 key_dim=key_dim, attn_ratio=attn_ratio,
                                 fast_math=False)
    out_exact = jax.block_until_ready(out_exact)

    # fast-math path (bf16 EUP exp + approx reciprocal): production configuration.
    out_fast = attention_pallas(x, singlex, kparams, num_heads=num_heads,
                                key_dim=key_dim, attn_ratio=attn_ratio,
                                fast_math=True)
    out_fast = jax.block_until_ready(out_fast)

    with jax.default_matmul_precision("highest"):
        ref = attention_ref(x, singlex, raw,
                            num_heads=num_heads, key_dim=key_dim, attn_ratio=attn_ratio)
        ref = jax.block_until_ready(ref)

    # bf16 matmul inputs (f32 MXU accumulation) -> loosened tolerance; the fast-math
    # path additionally uses bf16 exp + approx reciprocal (~2^-12), hence looser still.
    np.testing.assert_allclose(np.asarray(out_exact), np.asarray(ref), rtol=3e-2, atol=3e-2)
    np.testing.assert_allclose(np.asarray(out_fast), np.asarray(ref), rtol=6e-2, atol=6e-2)

    print("KERNEL_OK")
</pallas_src>

<mosaic_0001>
module attributes {stable_mosaic.version = 11 : i64} {
  func.func @attention_kernel(%arg0: i32, %arg1: i32, %arg2: memref<1x8x64xbf16, #tpu.memory_space<vmem>>, %arg3: memref<1x8x128xbf16, #tpu.memory_space<vmem>>, %arg4: memref<16x8xbf16, #tpu.memory_space<vmem>>, %arg5: memref<16x1xf32, #tpu.memory_space<vmem>>, %arg6: memref<16x8xbf16, #tpu.memory_space<vmem>>, %arg7: memref<16x1xf32, #tpu.memory_space<vmem>>, %arg8: memref<64x8xbf16, #tpu.memory_space<vmem>>, %arg9: memref<64x1xf32, #tpu.memory_space<vmem>>, %arg10: memref<2x8x32xbf16, #tpu.memory_space<vmem>>, %arg11: memref<8x1xf32, #tpu.memory_space<vmem>>, %arg12: memref<1x8x128xf32, #tpu.memory_space<vmem>>, %arg13: memref<2x8x64xbf16, #tpu.memory_space<vmem>>, %arg14: memref<2x33x64xbf16, #tpu.memory_space<vmem>>) attributes {dimension_semantics = [#tpu.dimension_semantics<parallel>, #tpu.dimension_semantics<arbitrary>], iteration_bounds = array<i64: 2, 1>, scalar_prefetch = 0 : i64, scratch_operands = 2 : i64, tpu.core_type = #tpu.core_type<tc>, window_params = [{transform_indices = @transform_0, window_bounds = array<i64: 1, 8, 64>}, {transform_indices = @transform_1, window_bounds = array<i64: 1, 8, 128>}, {pipeline_mode = #tpu.pipeline_mode<synchronous>, transform_indices = @transform_2, window_bounds = array<i64: 16, 8>}, {pipeline_mode = #tpu.pipeline_mode<synchronous>, transform_indices = @transform_3, window_bounds = array<i64: 16, 1>}, {pipeline_mode = #tpu.pipeline_mode<synchronous>, transform_indices = @transform_4, window_bounds = array<i64: 16, 8>}, {pipeline_mode = #tpu.pipeline_mode<synchronous>, transform_indices = @transform_5, window_bounds = array<i64: 16, 1>}, {pipeline_mode = #tpu.pipeline_mode<synchronous>, transform_indices = @transform_6, window_bounds = array<i64: 64, 8>}, {pipeline_mode = #tpu.pipeline_mode<synchronous>, transform_indices = @transform_7, window_bounds = array<i64: 64, 1>}, {pipeline_mode = #tpu.pipeline_mode<synchronous>, transform_indices = @transform_8, window_bounds = array<i64: 2, 8, 32>}, {pipeline_mode = #tpu.pipeline_mode<synchronous>, transform_indices = @transform_9, window_bounds = array<i64: 8, 1>}, {transform_indices = @transform_10, window_bounds = array<i64: 1, 8, 128>}]} {
    %c0_i32 = arith.constant 0 : i32
    %0 = arith.cmpi eq, %arg1, %c0_i32 : i32
    %1 = arith.extui %0 : i1 to i32
    %c0_i32_0 = arith.constant 0 : i32
    %2 = arith.cmpi ne, %1, %c0_i32_0 : i32
    scf.if %2 {
      %c0_39 = arith.constant 0 : index
      %c0_40 = arith.constant 0 : index
      %c0_41 = arith.constant 0 : index
      %66 = vector.load %arg2[%c0_39, %c0_40, %c0_41] : memref<1x8x64xbf16, #tpu.memory_space<vmem>>, vector<1x8x64xbf16>
      %67 = vector.shape_cast %66 : vector<1x8x64xbf16> to vector<8x64xbf16>
      %c0_42 = arith.constant 0 : index
      %c0_43 = arith.constant 0 : index
      %68 = vector.load %arg6[%c0_42, %c0_43] : memref<16x8xbf16, #tpu.memory_space<vmem>>, vector<16x8xbf16>
      %cst_44 = arith.constant dense<0.000000e+00> : vector<16x64xf32>
      %69 = tpu.matmul %68, %67, %cst_44 {dimension_numbers = #tpu.dot_dimension_numbers<[1], [0], [0], [1], [0, 0, 1, 1], [], []>} : vector<16x8xbf16>, vector<8x64xbf16>, vector<16x64xf32> -> vector<16x64xf32>
      %c0_45 = arith.constant 0 : index
      %c0_46 = arith.constant 0 : index
      %70 = vector.load %arg7[%c0_45, %c0_46] : memref<16x1xf32, #tpu.memory_space<vmem>>, vector<16x1xf32>
      %71 = vector.broadcast %70 : vector<16x1xf32> to vector<16x64xf32>
      %72 = arith.addf %69, %71 : vector<16x64xf32>
      %73 = arith.truncf %72 : vector<16x64xf32> to vector<16x64xbf16>
      %c0_47 = arith.constant 0 : index
      %c0_48 = arith.constant 0 : index
      %74 = vector.load %arg8[%c0_47, %c0_48] : memref<64x8xbf16, #tpu.memory_space<vmem>>, vector<64x8xbf16>
      %cst_49 = arith.constant dense<0.000000e+00> : vector<64x64xf32>
      %75 = tpu.matmul %74, %67, %cst_49 {dimension_numbers = #tpu.dot_dimension_numbers<[1], [0], [0], [1], [0, 0, 1, 1], [], []>} : vector<64x8xbf16>, vector<8x64xbf16>, vector<64x64xf32> -> vector<64x64xf32>
      %c0_50 = arith.constant 0 : index
      %c0_51 = arith.constant 0 : index
      %76 = vector.load %arg9[%c0_50, %c0_51] : memref<64x1xf32, #tpu.memory_space<vmem>>, vector<64x1xf32>
      %77 = vector.broadcast %76 : vector<64x1xf32> to vector<64x64xf32>
      %78 = arith.addf %75, %77 : vector<64x64xf32>
      %79 = arith.truncf %78 : vector<64x64xf32> to vector<64x64xbf16>
      %cst_52 = arith.constant 1.000000e+00 : bf16
      %80 = vector.broadcast %cst_52 : bf16 to vector<1x64xbf16>
      %81 = vector.extract_strided_slice %73 {offsets = [0, 0], sizes = [8, 64], strides = [1, 1]} : vector<16x64xbf16> to vector<8x64xbf16>
      %c0_53 = arith.constant 0 : index
      %c0_54 = arith.constant 0 : index
      %c0_55 = arith.constant 0 : index
      %82 = vector.load %arg13[%c0_53, %c0_54, %c0_55] : memref<2x8x64xbf16, #tpu.memory_space<vmem>>, vector<1x8x64xbf16>
      %83 = vector.shape_cast %82 : vector<1x8x64xbf16> to vector<8x64xbf16>
      %84 = vector.shape_cast %81 : vector<8x64xbf16> to vector<1x8x64xbf16>
      tpu.vector_store %arg13[%c0_53, %c0_54, %c0_55], %84 {strides = array<i32>} : memref<2x8x64xbf16, #tpu.memory_space<vmem>>, vector<1x8x64xbf16>,
      %85 = vector.extract_strided_slice %79 {offsets = [0, 0], sizes = [32, 64], strides = [1, 1]} : vector<64x64xbf16> to vector<32x64xbf16>
      %c0_56 = arith.constant 0 : index
      %c0_57 = arith.constant 0 : index
      %c0_58 = arith.constant 0 : index
      %86 = vector.load %arg14[%c0_56, %c0_57, %c0_58] : memref<2x33x64xbf16, #tpu.memory_space<vmem>>, vector<1x32x64xbf16>
      %87 = vector.shape_cast %86 : vector<1x32x64xbf16> to vector<32x64xbf16>
      %88 = vector.shape_cast %85 : vector<32x64xbf16> to vector<1x32x64xbf16>
      tpu.vector_store %arg14[%c0_56, %c0_57, %c0_58], %88 {strides = array<i32>} : memref<2x33x64xbf16, #tpu.memory_space<vmem>>, vector<1x32x64xbf16>,
      %c0_59 = arith.constant 0 : index
      %c32 = arith.constant 32 : index
      %c0_60 = arith.constant 0 : index
      %89 = vector.load %arg14[%c0_59, %c32, %c0_60] : memref<2x33x64xbf16, #tpu.memory_space<vmem>>, vector<1x1x64xbf16>
      %90 = vector.shape_cast %89 : vector<1x1x64xbf16> to vector<1x64xbf16>
      %91 = vector.shape_cast %80 : vector<1x64xbf16> to vector<1x1x64xbf16>
      tpu.vector_store %arg14[%c0_59, %c32, %c0_60], %91 {strides = array<i32>} : memref<2x33x64xbf16, #tpu.memory_space<vmem>>, vector<1x1x64xbf16>,
      %92 = vector.extract_strided_slice %73 {offsets = [8, 0], sizes = [8, 64], strides = [1, 1]} : vector<16x64xbf16> to vector<8x64xbf16>
      %c1_61 = arith.constant 1 : index
      %c0_62 = arith.constant 0 : index
      %c0_63 = arith.constant 0 : index
      %93 = vector.load %arg13[%c1_61, %c0_62, %c0_63] : memref<2x8x64xbf16, #tpu.memory_space<vmem>>, vector<1x8x64xbf16>
      %94 = vector.shape_cast %93 : vector<1x8x64xbf16> to vector<8x64xbf16>
      %95 = vector.shape_cast %92 : vector<8x64xbf16> to vector<1x8x64xbf16>
      tpu.vector_store %arg13[%c1_61, %c0_62, %c0_63], %95 {strides = array<i32>} : memref<2x8x64xbf16, #tpu.memory_space<vmem>>, vector<1x8x64xbf16>,
      %96 = vector.extract_strided_slice %79 {offsets = [32, 0], sizes = [32, 64], strides = [1, 1]} : vector<64x64xbf16> to vector<32x64xbf16>
      %c1_64 = arith.constant 1 : index
      %c0_65 = arith.constant 0 : index
      %c0_66 = arith.constant 0 : index
      %97 = vector.load %arg14[%c1_64, %c0_65, %c0_66] : memref<2x33x64xbf16, #tpu.memory_space<vmem>>, vector<1x32x64xbf16>
      %98 = vector.shape_cast %97 : vector<1x32x64xbf16> to vector<32x64xbf16>
      %99 = vector.shape_cast %96 : vector<32x64xbf16> to vector<1x32x64xbf16>
      tpu.vector_store %arg14[%c1_64, %c0_65, %c0_66], %99 {strides = array<i32>} : memref<2x33x64xbf16, #tpu.memory_space<vmem>>, vector<1x32x64xbf16>,
      %c1_67 = arith.constant 1 : index
      %c32_68 = arith.constant 32 : index
      %c0_69 = arith.constant 0 : index
      %100 = vector.load %arg14[%c1_67, %c32_68, %c0_69] : memref<2x33x64xbf16, #tpu.memory_space<vmem>>, vector<1x1x64xbf16>
      %101 = vector.shape_cast %100 : vector<1x1x64xbf16> to vector<1x64xbf16>
      %102 = vector.shape_cast %80 : vector<1x64xbf16> to vector<1x1x64xbf16>
      tpu.vector_store %arg14[%c1_67, %c32_68, %c0_69], %102 {strides = array<i32>} : memref<2x33x64xbf16, #tpu.memory_space<vmem>>, vector<1x1x64xbf16>,
    } else {
    }
    %c0 = arith.constant 0 : index
    %c0_1 = arith.constant 0 : index
    %c0_2 = arith.constant 0 : index
    %3 = vector.load %arg3[%c0, %c0_1, %c0_2] : memref<1x8x128xbf16, #tpu.memory_space<vmem>>, vector<1x8x128xbf16>
    %4 = vector.shape_cast %3 : vector<1x8x128xbf16> to vector<8x128xbf16>
    %c0_3 = arith.constant 0 : index
    %c0_4 = arith.constant 0 : index
    %5 = vector.load %arg4[%c0_3, %c0_4] : memref<16x8xbf16, #tpu.memory_space<vmem>>, vector<16x8xbf16>
    %cst = arith.constant dense<0.000000e+00> : vector<16x128xf32>
    %6 = tpu.matmul %5, %4, %cst {dimension_numbers = #tpu.dot_dimension_numbers<[1], [0], [0], [1], [0, 0, 1, 1], [], []>} : vector<16x8xbf16>, vector<8x128xbf16>, vector<16x128xf32> -> vector<16x128xf32>
    %c0_5 = arith.constant 0 : index
    %c0_6 = arith.constant 0 : index
    %7 = vector.load %arg5[%c0_5, %c0_6] : memref<16x1xf32, #tpu.memory_space<vmem>>, vector<16x1xf32>
    %8 = vector.broadcast %7 : vector<16x1xf32> to vector<16x128xf32>
    %9 = arith.addf %6, %8 : vector<16x128xf32>
    %10 = arith.truncf %9 : vector<16x128xf32> to vector<16x128xbf16>
    %11 = vector.extract_strided_slice %10 {offsets = [0, 0], sizes = [8, 128], strides = [1, 1]} : vector<16x128xbf16> to vector<8x128xbf16>
    %c0_7 = arith.constant 0 : index
    %c0_8 = arith.constant 0 : index
    %c0_9 = arith.constant 0 : index
    %12 = vector.load %arg13[%c0_7, %c0_8, %c0_9] : memref<2x8x64xbf16, #tpu.memory_space<vmem>>, vector<1x8x64xbf16>
    %13 = vector.shape_cast %12 : vector<1x8x64xbf16> to vector<8x64xbf16>
    %c0_10 = arith.constant 0 : index
    %c0_11 = arith.constant 0 : index
    %c0_12 = arith.constant 0 : index
    %14 = vector.load %arg14[%c0_10, %c0_11, %c0_12] : memref<2x33x64xbf16, #tpu.memory_space<vmem>>, vector<1x33x64xbf16>
    %15 = vector.shape_cast %14 : vector<1x33x64xbf16> to vector<33x64xbf16>
    %cst_13 = arith.constant dense<0.000000e+00> : vector<128x64xf32>
    %16 = tpu.matmul %11, %13, %cst_13 {dimension_numbers = #tpu.dot_dimension_numbers<[0], [0], [1], [1], [0, 1, 1, 1], [], []>} : vector<8x128xbf16>, vector<8x64xbf16>, vector<128x64xf32> -> vector<128x64xf32>
    %cst_14 = arith.constant dense<0xFF800000> : vector<128xf32>
    %17 = vector.multi_reduction <maximumf>, %16, %cst_14 [1] : vector<128x64xf32> to vector<128xf32>
    %18 = vector.shape_cast %17 : vector<128xf32> to vector<128x1xf32>
    %19 = vector.broadcast %18 : vector<128x1xf32> to vector<128x64xf32>
    %20 = arith.subf %16, %19 : vector<128x64xf32>
    %21 = math.exp %20 : vector<128x64xf32>
    %22 = arith.truncf %21 : vector<128x64xf32> to vector<128x64xbf16>
    %cst_15 = arith.constant dense<0.000000e+00> : vector<33x128xf32>
    %23 = tpu.matmul %15, %22, %cst_15 {dimension_numbers = #tpu.dot_dimension_numbers<[1], [1], [0], [0], [0, 0, 1, 0], [], []>} : vector<33x64xbf16>, vector<128x64xbf16>, vector<33x128xf32> -> vector<33x128xf32>
    %24 = vector.extract_strided_slice %23 {offsets = [0, 0], sizes = [32, 128], strides = [1, 1]} : vector<33x128xf32> to vector<32x128xf32>
    %25 = vector.extract_strided_slice %23 {offsets = [32, 0], sizes = [1, 128], strides = [1, 1]} : vector<33x128xf32> to vector<1x128xf32>
    %26 = tpu.reciprocal %25 : vector<1x128xf32> -> vector<1x128xf32>
    %27 = vector.broadcast %26 : vector<1x128xf32> to vector<32x128xf32>
    %28 = arith.mulf %24, %27 : vector<32x128xf32>
    %cst_16 = arith.constant 0.000000e+00 : f32
    %29 = vector.broadcast %cst_16 : f32 to vector<32x128xf32>
    %30 = arith.maximumf %28, %29 : vector<32x128xf32>
    %31 = arith.truncf %30 : vector<32x128xf32> to vector<32x128xbf16>
    %c0_17 = arith.constant 0 : index
    %c0_18 = arith.constant 0 : index
    %c0_19 = arith.constant 0 : index
    %32 = vector.load %arg10[%c0_17, %c0_18, %c0_19] : memref<2x8x32xbf16, #tpu.memory_space<vmem>>, vector<1x8x32xbf16>
    %33 = vector.shape_cast %32 : vector<1x8x32xbf16> to vector<8x32xbf16>
    %cst_20 = arith.constant dense<0.000000e+00> : vector<8x128xf32>
    %34 = tpu.matmul %33, %31, %cst_20 {dimension_numbers = #tpu.dot_dimension_numbers<[1], [0], [0], [1], [0, 0, 1, 1], [], []>} : vector<8x32xbf16>, vector<32x128xbf16>, vector<8x128xf32> -> vector<8x128xf32>
    %35 = vector.extract_strided_slice %10 {offsets = [8, 0], sizes = [8, 128], strides = [1, 1]} : vector<16x128xbf16> to vector<8x128xbf16>
    %c1 = arith.constant 1 : index
    %c0_21 = arith.constant 0 : index
    %c0_22 = arith.constant 0 : index
    %36 = vector.load %arg13[%c1, %c0_21, %c0_22] : memref<2x8x64xbf16, #tpu.memory_space<vmem>>, vector<1x8x64xbf16>
    %37 = vector.shape_cast %36 : vector<1x8x64xbf16> to vector<8x64xbf16>
    %c1_23 = arith.constant 1 : index
    %c0_24 = arith.constant 0 : index
    %c0_25 = arith.constant 0 : index
    %38 = vector.load %arg14[%c1_23, %c0_24, %c0_25] : memref<2x33x64xbf16, #tpu.memory_space<vmem>>, vector<1x33x64xbf16>
    %39 = vector.shape_cast %38 : vector<1x33x64xbf16> to vector<33x64xbf16>
    %cst_26 = arith.constant dense<0.000000e+00> : vector<128x64xf32>
    %40 = tpu.matmul %35, %37, %cst_26 {dimension_numbers = #tpu.dot_dimension_numbers<[0], [0], [1], [1], [0, 1, 1, 1], [], []>} : vector<8x128xbf16>, vector<8x64xbf16>, vector<128x64xf32> -> vector<128x64xf32>
    %cst_27 = arith.constant dense<0xFF800000> : vector<128xf32>
    %41 = vector.multi_reduction <maximumf>, %40, %cst_27 [1] : vector<128x64xf32> to vector<128xf32>
    %42 = vector.shape_cast %41 : vector<128xf32> to vector<128x1xf32>
    %43 = vector.broadcast %42 : vector<128x1xf32> to vector<128x64xf32>
    %44 = arith.subf %40, %43 : vector<128x64xf32>
    %45 = math.exp %44 : vector<128x64xf32>
    %46 = arith.truncf %45 : vector<128x64xf32> to vector<128x64xbf16>
    %cst_28 = arith.constant dense<0.000000e+00> : vector<33x128xf32>
    %47 = tpu.matmul %39, %46, %cst_28 {dimension_numbers = #tpu.dot_dimension_numbers<[1], [1], [0], [0], [0, 0, 1, 0], [], []>} : vector<33x64xbf16>, vector<128x64xbf16>, vector<33x128xf32> -> vector<33x128xf32>
    %48 = vector.extract_strided_slice %47 {offsets = [0, 0], sizes = [32, 128], strides = [1, 1]} : vector<33x128xf32> to vector<32x128xf32>
    %49 = vector.extract_strided_slice %47 {offsets = [32, 0], sizes = [1, 128], strides = [1, 1]} : vector<33x128xf32> to vector<1x128xf32>
    %50 = tpu.reciprocal %49 : vector<1x128xf32> -> vector<1x128xf32>
    %51 = vector.broadcast %50 : vector<1x128xf32> to vector<32x128xf32>
    %52 = arith.mulf %48, %51 : vector<32x128xf32>
    %cst_29 = arith.constant 0.000000e+00 : f32
    %53 = vector.broadcast %cst_29 : f32 to vector<32x128xf32>
    %54 = arith.maximumf %52, %53 : vector<32x128xf32>
    %55 = arith.truncf %54 : vector<32x128xf32> to vector<32x128xbf16>
    %c1_30 = arith.constant 1 : index
    %c0_31 = arith.constant 0 : index
    %c0_32 = arith.constant 0 : index
    %56 = vector.load %arg10[%c1_30, %c0_31, %c0_32] : memref<2x8x32xbf16, #tpu.memory_space<vmem>>, vector<1x8x32xbf16>
    %57 = vector.shape_cast %56 : vector<1x8x32xbf16> to vector<8x32xbf16>
    %cst_33 = arith.constant dense<0.000000e+00> : vector<8x128xf32>
    %58 = tpu.matmul %57, %55, %cst_33 {dimension_numbers = #tpu.dot_dimension_numbers<[1], [0], [0], [1], [0, 0, 1, 1], [], []>} : vector<8x32xbf16>, vector<32x128xbf16>, vector<8x128xf32> -> vector<8x128xf32>
    %59 = arith.addf %34, %58 : vector<8x128xf32>
    %c0_34 = arith.constant 0 : index
    %c0_35 = arith.constant 0 : index
    %60 = vector.load %arg11[%c0_34, %c0_35] : memref<8x1xf32, #tpu.memory_space<vmem>>, vector<8x1xf32>
    %61 = vector.broadcast %60 : vector<8x1xf32> to vector<8x128xf32>
    %62 = arith.addf %59, %61 : vector<8x128xf32>
    %c0_36 = arith.constant 0 : index
    %c0_37 = arith.constant 0 : index
    %c0_38 = arith.constant 0 : index
    %63 = vector.load %arg12[%c0_36, %c0_37, %c0_38] : memref<1x8x128xf32, #tpu.memory_space<vmem>>, vector<1x8x128xf32>
    %64 = vector.shape_cast %63 : vector<1x8x128xf32> to vector<8x128xf32>
    %65 = vector.shape_cast %62 : vector<8x128xf32> to vector<1x8x128xf32>
    tpu.vector_store %arg12[%c0_36, %c0_37, %c0_38], %65 {strides = array<i32>} : memref<1x8x128xf32, #tpu.memory_space<vmem>>, vector<1x8x128xf32>,
    return
  }
  func.func @transform_0(%arg0: i32, %arg1: i32) -> (i32, i32, i32) {
    %c0_i32 = arith.constant 0 : i32
    %c0_i32_0 = arith.constant 0 : i32
    %c0_i32_1 = arith.constant 0 : i32
    return %arg0, %c0_i32, %c0_i32_0 : i32, i32, i32
  }
  func.func @transform_1(%arg0: i32, %arg1: i32) -> (i32, i32, i32) {
    %c0_i32 = arith.constant 0 : i32
    %c0_i32_0 = arith.constant 0 : i32
    return %arg0, %c0_i32, %arg1 : i32, i32, i32
  }
  func.func @transform_2(%arg0: i32, %arg1: i32) -> (i32, i32) {
    %c0_i32 = arith.constant 0 : i32
    %c0_i32_0 = arith.constant 0 : i32
    %c0_i32_1 = arith.constant 0 : i32
    return %c0_i32, %c0_i32_0 : i32, i32
  }
  func.func @transform_3(%arg0: i32, %arg1: i32) -> (i32, i32) {
    %c0_i32 = arith.constant 0 : i32
    %c0_i32_0 = arith.constant 0 : i32
    %c0_i32_1 = arith.constant 0 : i32
    return %c0_i32, %c0_i32_0 : i32, i32
  }
  func.func @transform_4(%arg0: i32, %arg1: i32) -> (i32, i32) {
    %c0_i32 = arith.constant 0 : i32
    %c0_i32_0 = arith.constant 0 : i32
    %c0_i32_1 = arith.constant 0 : i32
    return %c0_i32, %c0_i32_0 : i32, i32
  }
  func.func @transform_5(%arg0: i32, %arg1: i32) -> (i32, i32) {
    %c0_i32 = arith.constant 0 : i32
    %c0_i32_0 = arith.constant 0 : i32
    %c0_i32_1 = arith.constant 0 : i32
    return %c0_i32, %c0_i32_0 : i32, i32
  }
  func.func @transform_6(%arg0: i32, %arg1: i32) -> (i32, i32) {
    %c0_i32 = arith.constant 0 : i32
    %c0_i32_0 = arith.constant 0 : i32
    %c0_i32_1 = arith.constant 0 : i32
    return %c0_i32, %c0_i32_0 : i32, i32
  }
  func.func @transform_7(%arg0: i32, %arg1: i32) -> (i32, i32) {
    %c0_i32 = arith.constant 0 : i32
    %c0_i32_0 = arith.constant 0 : i32
    %c0_i32_1 = arith.constant 0 : i32
    return %c0_i32, %c0_i32_0 : i32, i32
  }
  func.func @transform_8(%arg0: i32, %arg1: i32) -> (i32, i32, i32) {
    %c0_i32 = arith.constant 0 : i32
    %c0_i32_0 = arith.constant 0 : i32
    %c0_i32_1 = arith.constant 0 : i32
    %c0_i32_2 = arith.constant 0 : i32
    return %c0_i32, %c0_i32_0, %c0_i32_1 : i32, i32, i32
  }
  func.func @transform_9(%arg0: i32, %arg1: i32) -> (i32, i32) {
    %c0_i32 = arith.constant 0 : i32
    %c0_i32_0 = arith.constant 0 : i32
    %c0_i32_1 = arith.constant 0 : i32
    return %c0_i32, %c0_i32_0 : i32, i32
  }
  func.func @transform_10(%arg0: i32, %arg1: i32) -> (i32, i32, i32) {
    %c0_i32 = arith.constant 0 : i32
    %c0_i32_0 = arith.constant 0 : i32
    return %arg0, %c0_i32, %arg1 : i32, i32, i32
  }
}

</mosaic_0001>

<bundles_post_ra>
// kernel: tpu_custom_call.1
= control target key start
LH: loop header
LB: loop body
LE: loop exit
PB: predicated region body
PF: predicated region fallthrough
CT: control target
= control target key end

     0   :  { %15 = vsyncpa [#allocation5], 0  ;;  %s2720_s0 = inlined_call_operand.vmem [shape: bf16[2,8,64], index: 0, kind: input, shape index: {}]   ;;  %s2721_s1 = inlined_call_operand.vmem [shape: bf16[2,8,128], index: 1, kind: input, shape index: {}]   ;;  %s2722_s2 = inlined_call_operand.vmem [shape: bf16[16,8], index: 2, kind: input, shape index: {}]   ;;  %s2723_s3 = inlined_call_operand.vmem [shape: f32[16,1], index: 3, kind: input, shape index: {}]   ;;  %s2724_s4 = inlined_call_operand.vmem [shape: bf16[16,8], index: 4, kind: input, shape index: {}]   ;;  %s2725_s5 = inlined_call_operand.vmem [shape: f32[16,1], index: 5, kind: input, shape index: {}]   ;;  %s2726_s6 = inlined_call_operand.vmem [shape: bf16[64,8], index: 6, kind: input, shape index: {}]   ;;  %s2727_s7 = inlined_call_operand.vmem [shape: f32[64,1], index: 7, kind: input, shape index: {}]   ;;  %s2728_s8 = inlined_call_operand.vmem [shape: bf16[2,8,32], index: 8, kind: input, shape index: {}]   ;;  %s2729_s9 = inlined_call_operand.vmem [shape: f32[8,1], index: 9, kind: input, shape index: {}]   ;;  %s2730_s10 = inlined_call_operand.hbm [shape: f32[2,8,128], index: 10, kind: output, shape index: {}]  }
   0x1   :  { %17 = vsyncpa [#allocation5 + $0x1], 0  ;;  %s2233_s13 = smov 0   ;;  %s2235_s14 = smov 0  }
   0x2   :  { %s2237_s15 = smov 0   ;;  %s2239_s16 = smov 0  }
   0x3   :  { %s2241_s17 = smov 0   ;;  %s2243_s18 = smov 0  }
   0x4 LB: > { %2733 = sst [smem:[#allocation7_spill]] %s2168_s17  ;;  %s1690_s19 = sadd.s32 4294967295, %s2172_s18   ;;  %s2172_s18 = sphi %s2243_s18, %s23_s18   ;;  %s2168_s17 = sphi %s2241_s17, %s2738_s17   ;;  %s2164_s16 = sphi %s2239_s16, %s2737_s16   ;;  %s2160_s15 = sphi %s2237_s15, %s2741_s15   ;;  %s2156_s14 = sphi %s2235_s14, %s2740_s14   ;;  %s2152_s13 = sphi %s2233_s13, %s2739_s13  }
   0x5   : > { %s1691_s20 = sadd.s32 4294967294, %s2172_s18   ;;  %s35_s21 = sadd.s32 1, %s2168_s17 }
   0x6   : > { %s266_s22 = sadd.s32 1, %s2160_s15  ;;  %p37_p0 = scmp.ge.s32.totalorder %s35_s21, 2 }
   0x7   : > { %p276_p1 = scmp.ne.s32.totalorder %s2160_s15, %s2156_s14  ;;  %p277_p2 = scmp.eq.s32.totalorder %s1690_s19, 1 }
   0x8   : > { %p282_p3 = scmp.ne.s32.totalorder %s2156_s14, %s2152_s13  ;;  %s2743_s21 = smov (%p37_p0, %s35_s21), 0 }
   0x9   : > { %2734 = sst [smem:[#allocation8_spill]] %s2743_s21  ;;  %p2273_p4 = por %p277_p2, %p276_p1 }
   0xa   : > { %p283_p5 = scmp.eq.s32.totalorder %s1691_s20, 1  ;;  %s261_s24 = ssub.s32 %s2168_s17, %s2743_s21 }
   0xb   : > { %p1694_p6 = scmp.ge.s32.totalorder %s2172_s18, 1  ;;  %p264_p7 = scmp.eq.s32.totalorder %s261_s24, 0 }
   0xc   : > { %p2280_p8 = por %p283_p5, %p282_p3  ;;  %p342_p9 = scmp.lt.s32.totalorder %s2172_s18, 3 }
   0xd   : > { %s2286_s26 = scalar_select %p264_p7, %s2160_s15, %s266_s22  }
   0xe   : > { %p343_p10 = pnand %p1694_p6, %p342_p9 }
   0xf   : > { %p386_p11 = scmp.lt.s32.totalorder (!%p343_p10), %s2164_s16, 1  ;;  %v2174_v0 = vmov (!%p343_p10), 0.0   ;;  %vm2175_vm0 = vmmov (!%p343_p10), 0   ;;  %vm427_vm1 = vcmask (!%p343_p10), 1043456   ;;  %v2176_v1 = vmov (!%p343_p10), 0   ;;  %v407_v2 = vld [vmem:[%s2725_s5 + $0x8] sm:$0xff] (!%p343_p10) }
  0x10   : > { %346 = sbr.rel (%p343_p10) target bundleno = 1318 (0x526), region = 60  ;;  %1818 = vmatprep.subr.bf16.mxu0 (!%p343_p10), %v2174_v0  ;;  %1820 = vmatprep.mubr.msk.bf16.mxu0 (!%p343_p10), %vm2175_vm0, %v2174_v0  ;;  %v2014_v3 = vld [vmem:[%s2724_s4] sm:$0xff] (!%p343_p10)   ;;  %v688_v7 = vld [vmem:[%s2723_s3 + $0x8] sm:$0xff] (!%p343_p10)  ;;  %v2018_v9 = vld [vmem:[%s2726_s6 + $0x10] sm:$0xff] (!%p343_p10)   ;;  %vm423_vm2 = vcmask (!%p343_p10), 64512   ;;  %vm630_vm3 = vcmask (!%p343_p10), 519168  }
  0x11   : > { %2013 = vset.pattern.permute.xlu1 (!%p343_p10), %v2176_v1  ;;  %2012 = vset.pattern.permute.xlu0 (!%p343_p10), %v2176_v1  ;;  %v406_v4 = vld [vmem:[%s2725_s5] sm:$0xff] (!%p343_p10)  ;;  %v2019_v10 = vld [vmem:[%s2726_s6 + $0x18] sm:$0xff] (!%p343_p10)   ;;  %v2016_v13 = vld [vmem:[%s2726_s6 + $0x8] sm:$0xff] (!%p343_p10)   ;;  %vm900_vm4 = vcmask (!%p343_p10), 523264   ;;  %vm650_vm5 = vcmask (!%p343_p10), 516096   ;;  %vm1497_vm8 = vcmask (!%p343_p10), 261120  }
  0x12   : > { %415 = vperm.xlu1 (!%p343_p10), %2013, %v407_v2   ;;  %v687_v5 = vld [vmem:[%s2723_s3] sm:$0xff] (!%p343_p10)  ;;  %1830 = vmatprep.mubr.msk.bf16.mxu1 (!%p343_p10), %vm423_vm2, %v2018_v9  ;;  %vm651_vm6 = vsmask.f32 (!%p343_p10), 256  ;;  %s1751_s12 = sshll.u32 (!%p343_p10), %s2164_s16, 7 }
  0x13   : > { %691 = vperm.xlu0 (!%p343_p10), %2012, %v687_v5   ;;  %v2015_v11 = vld [vmem:[%s2726_s6] sm:$0xff] (!%p343_p10)   ;;  %vm652_vm7 = vmand (!%p343_p10), %vm650_vm5, %vm651_vm6  ;;  %s2673_s22 = scalar_lea.hbm (!%p343_p10), %s2730_s10, %s1751_s12 }
  0x14   : > { %v2017_v15 = vld [vmem:[%s2722_s2] sm:$0xff] (!%p343_p10)  }
  0x15   : > { %v485_v46 = vld [vmem:[%s2727_s7 + $0x20] sm:$0xff] (!%p343_p10) }
  0x16   : > { %410 = vperm.xlu1 (!%p343_p10), %2013, %v406_v4  }
  0x17   : > { %s2293_s27 = scalar_select %p386_p11, %s2164_s16, 1  ;;  %696 = vperm.xlu0 %2012, %v688_v7  }
  0x19   : > { %s1696_s28 = sshll.u32 %s2293_s27, 2 }
  0x1a   : > { %s389_s19 = scalar_lea.vmem %s2720_s0, %s1696_s28  ;;  %s396_s27 = scalar_lea.vmem %s2721_s1, %s1696_s28 }
  0x1b   : > { %v403_v6 = vld [vmem:[%s389_s19] sm:$0xf]  ;;  %s383_s28 = sand.u32 1, %s2156_s14  }
  0x1c   : > { %v429_v8 = vsel %vm427_vm1, %v403_v6, 0  ;;  %1951 = vmatprep.subr.msk.bf16.mxu1 %vm427_vm1, %v403_v6  ;;  %v684_v12 = vld [vmem:[%s396_s27] sm:$0xf]  ;;  %s1695_s11 = sshll.u32 %s383_s28, 3  ;;  %s1593_s16 = scalar_lea.sflag [#allocation5], %s383_s28 }
  0x1d   : > { %1819 = vmatpush3.bf16.msra.mxu0 %v429_v8  ;;  %1949 = vmatpush3.bf16.msra.mxu1 %v429_v8  ;;  %v710_v14 = vsel %vm427_vm1, %v684_v12, 0  ;;  %s385_s21 = scalar_lea.vmem [#allocation4], %s1695_s11  ;;  %s2177_s27 = smov [#allocation4]  }
  0x1e   : > { %1950 = vmatprep.subr.msk.bf16.mxu0 %vm427_vm1, %v403_v6  ;;  %s1607_s20 = sshll.u32 %s385_s21, 4  ;;  %s2098_s29 = sshll.u32 %s2177_s27, 4  ;;  %s2675_s20 = int_to_ptr.vmem [resolvable:$true] %s1607_s20  ;;  %s2099_s29 = int_to_ptr.vmem [resolvable:$false] %s2098_s29 }
  0x1f   : > { %s2094_s24 = scalar_lea.vmem %s2675_s20, 128  ;;  %s2100_s30 = scalar_lea.vmem %s2099_s29, 256 }
  0x20   : > { %1821 = vmatmul.mubr.msk.bf16.vlgmr.msra.gmra.mrb[0].mxu0 %vm423_vm2, %v2014_v3  ;;  %1831 = vmatmul.mubr.msk.bf16.vlgmr.msra.gmra.mrb[0].mxu1 %vm423_vm2, %v2019_v10  ;;  %p2095_p12 = scmp.ne.s32.totalorder %s2675_s20, %s2094_s24  ;;  %p2101_p1 = scmp.lt.s32.totalorder %s2675_s20, %s2099_s29 }
  0x21   : > { %1825 = vmatpush3.bf16.msra.mxu0 %v429_v8  ;;  %1826 = vmatprep.mubr.msk.bf16.mxu0 %vm423_vm2, %v2015_v11  ;;  %p2102_p2 = scmp.lt.s32.totalorder %s2100_s30, %s2094_s24 }
  0x22   : > { %1834 = vmatprep.subr.bf16.mxu0 %v2174_v0  ;;  %p2096_p13 = pnand %p2095_p12, %p2273_p4 }
  0x23   : > { %p2103_p3 = por %p2102_p2, %p2101_p1 }
  0x24   : > { %p2097_p0 = pneg %p2096_p13 }
  0x26   : > { %p2104_p5 = pnand %p2103_p3, %p2097_p0 }
  0x28   : > { %1827 = vmatmul.mubr.msk.bf16.vlgmr.msra.gmra.mrb[4].mxu0 %vm423_vm2, %v2016_v13 }
  0x29   : > { %1835 = vmatpush3.bf16.msra.mxu0 %v710_v14  ;;  %1836 = vmatprep.mubr.msk.bf16.mxu0 %vm2175_vm0, %v2174_v0 }
  0x30   : > { %1837 = vmatmul.mubr.msk.bf16.vlgmr.msra.gmra.mrb[8].mxu0 %vm423_vm2, %v2017_v15 }
  0x91   : > { %v416_v16 = vpop.permute.xlu1 %415 }
  0x92   : > { %v692_v30 = vpop.permute.xlu0 %691 }
  0x95   : > { %v411_v17 = vpop.permute.xlu1 %410 }
  0x96   : > { %v697_v37 = vpop.permute.xlu0 %696 }
  0xf3   : > { %v465_v18 = vpop.f32.mrb[0].mxu0  ;;  %v2361_v44 = vpop.f32.mrb[0].mxu1 }
  0xf4   : > { %v1822_v19 = vpop.f32.mrb[1].mxu0  ;;  %v466_v21 = vadd.f32 %v465_v18, %v411_v17  ;;  %v611_v45 = vpop.f32.mrb[1].mxu1 }
  0xf5   : > { %v468_v20 = vpop.f32.mrb[2].mxu0  ;;  %v2366_v47 = vpop.f32.mrb[2].mxu1 }
  0xf6   : > { %v469_v22 = vadd.f32 %v468_v20, %v416_v16  ;;  %v1823_v23 = vpop.f32.mrb[3].mxu0  ;;  %v2368_v48 = vpop.f32.mrb[3].mxu1 }
  0xf8   : > { %v472_v24 = vpack.c.bf16 %v469_v22, %v466_v21  ;;  %v1758_v25 = vpack.c.bf16 %v469_v22, %v469_v22 }
  0xfa   : > { %631 = vst.msk [vmem:[#allocation2] sm:$0xf] %vm630_vm3, %v472_v24  ;;  %661 = vst.msk [vmem:[#allocation2 + $0x4] sm:$0xf] %vm630_vm3, %v1758_v25 }
  0xfb   : > { %v2347_v26 = vpop.f32.mrb[4].mxu0 }
  0xfc   : > { %v2349_v27 = vpop.f32.mrb[5].mxu0 }
  0xfd   : > { %v2351_v28 = vpop.f32.mrb[6].mxu0 }
  0xfe   : > { %v2353_v29 = vpop.f32.mrb[7].mxu0 }
 0x101   : > { %v754_v31 = vld [vmem:[#allocation2] sm:$0xf]  ;;  %v1124_v32 = vld [vmem:[#allocation2 + $0x4] sm:$0xf] }
 0x102   : > { %1952 = vmatprep.subr.msk.bf16.mxu1 %vm427_vm1, %v754_v31  ;;  %1953 = vmatprep.subr.msk.bf16.mxu0 %vm427_vm1, %v1124_v32  ;;  %v801_v33 = vsel %vm427_vm1, %v754_v31, 0  ;;  %v1175_v34 = vsel %vm427_vm1, %v1124_v32, 0 }
 0x103   : > { %v746_v35 = vpop.f32.mrb[8].mxu0  ;;  %1841 = vmatpush3.bf16.msra.mxu1 %v801_v33  ;;  %1887 = vmatpush3.bf16.msra.mxu0 %v1175_v34 }
 0x104   : > { %v1838_v36 = vpop.f32.mrb[9].mxu0  ;;  %1904 = vmatprep.subr.bf16.mxu0 %v2174_v0  ;;  %1858 = vmatprep.subr.bf16.mxu1 %v2174_v0  ;;  %v747_v39 = vadd.f32 %v746_v35, %v692_v30 }
 0x105   : > { %v749_v38 = vpop.f32.mrb[10].mxu0 }
 0x106   : > { %v750_v40 = vadd.f32 %v749_v38, %v697_v37  ;;  %v1839_v41 = vpop.f32.mrb[11].mxu0 }
 0x108   : > { %v753_v42 = vpack.c.bf16 %v750_v40, %v747_v39 }
 0x10a   : > { %760 = vxpose.xlu1.c.b16.start.end [1/1] (short) %v753_v42, 128  ;;  %v1132_v43 = vrot.slane %v753_v42, 4 }
 0x10c   : > { %1134 = vxpose.xlu0.c.b16.start.end [1/1] (short) %v1132_v43, 128 }
 0x12a   : > { %511 = vperm.xlu1 %2013, %v485_v46  }
 0x170   : > { %v768_v49 = vpop.trf.xlu1 }
 0x171   : > { %1842 = vmatprep.mubr.msk.bf16.mxu1 %vm423_vm2, %v768_v49 }
 0x172   : > { %v1142_v50 = vpop.trf.xlu0 }
 0x173   : > { %1888 = vmatprep.mubr.msk.bf16.mxu0 %vm423_vm2, %v1142_v50 }
 0x174   : > { %v769_v51 = vpop.trf.xlu1 }
 0x175   : > { %1843 = vmatmul.mubr.msk.bf16.vlgmr.msra.gmra.mrb[4].mxu1 %vm423_vm2, %v769_v51 }
 0x176   : > { %v1143_v52 = vpop.trf.xlu0 }
 0x177   : > { %1889 = vmatmul.mubr.msk.bf16.vlgmr.msra.gmra.mrb[12].mxu0 %vm423_vm2, %v1143_v52 }
 0x178   : > { %v770_v53 = vpop.trf.xlu1 }
 0x179   : > { %1846 = vmatprep.mubr.msk.bf16.mxu1 %vm423_vm2, %v770_v53 }
 0x17a   : > { %v1144_v54 = vpop.trf.xlu0 }
 0x17b   : > { %1892 = vmatprep.mubr.msk.bf16.mxu0 %vm423_vm2, %v1144_v54 }
 0x17c   : > { %v771_v55 = vpop.trf.xlu1 }
 0x17d   : > { %1847 = vmatmul.mubr.msk.bf16.gmra.mrb[8].mxu1 %vm423_vm2, %v771_v55 }
 0x17e   : > { %v1145_v56 = vpop.trf.xlu0 }
 0x17f   : > { %1893 = vmatmul.mubr.msk.bf16.gmra.mrb[16].mxu0 %vm423_vm2, %v1145_v56 }
 0x180   : > { %v772_v57 = vpop.trf.xlu1 }
 0x181   : > { %1850 = vmatprep.mubr.msk.bf16.mxu1 %vm423_vm2, %v772_v57 }
 0x182   : > { %v1146_v58 = vpop.trf.xlu0 }
 0x183   : > { %1896 = vmatprep.mubr.msk.bf16.mxu0 %vm423_vm2, %v1146_v58 }
 0x184   : > { %v773_v59 = vpop.trf.xlu1 }
 0x185   : > { %1851 = vmatmul.mubr.msk.bf16.gmra.mrb[12].mxu1 %vm423_vm2, %v773_v59 }
 0x186   : > { %v1147_v60 = vpop.trf.xlu0 }
 0x187   : > { %1897 = vmatmul.mubr.msk.bf16.gmra.mrb[20].mxu0 %vm423_vm2, %v1147_v60 }
 0x188   : > { %v774_v61 = vpop.trf.xlu1 }
 0x189   : > { %1854 = vmatprep.mubr.msk.bf16.mxu1 %vm423_vm2, %v774_v61 }
 0x18a   : > { %v1148_v62 = vpop.trf.xlu0 }
 0x18b   : > { %1900 = vmatprep.mubr.msk.bf16.mxu0 %vm423_vm2, %v1148_v62 }
 0x18c   : > { %v775_v63 = vpop.trf.xlu1 }
 0x18d   : > { %1855 = vmatmul.mubr.msk.bf16.gmra.mrb[16].mxu1 %vm423_vm2, %v775_v63 }
 0x18e   : > { %v1149_v1 = vpop.trf.xlu0  ;;  %1874 = vmatprep.mubr.msk.bf16.mxu1 %vm2175_vm0, %v2174_v0 }
 0x18f   : > { %1901 = vmatmul.mubr.msk.bf16.gmra.mrb[24].mxu0 %vm423_vm2, %v1149_v1 }
 0x190   : > { %1920 = vmatprep.mubr.msk.bf16.mxu0 %vm2175_vm0, %v2174_v0 }
 0x1a9   : > { %v512_v2 = vpop.permute.xlu1 %511 }
 0x1aa   : > { %v612_v3 = vadd.f32 %v611_v45, %v512_v2 }
 0x1ac   : > { %v1759_v4 = vpack.c.bf16 %v612_v3, %v612_v3 }
 0x1ae   : > { %677 = vst.msk [vmem:[#allocation3 + $0x14] sm:$0xf] %vm630_vm3, %v1759_v4 }
 0x248   : > { %v2391_v5 = vpop.f32.mrb[4].mxu1 }
 0x249   : > { %v2393_v6 = vpop.f32.mrb[5].mxu1  ;;  %v907_v7 = vsel %vm900_vm4, %v2391_v5, -inf }
 0x24a   : > { %908 = vmax.xlane.f32.xlu1 %v907_v7  ;;  %v2397_v8 = vpop.f32.mrb[6].mxu1  ;;  %v901_v9 = vsel %vm900_vm4, %v2393_v6, -inf  ;;  %v2401_v10 = vpop.f32.mrb[12].mxu0 }
 0x24b   : > { %v2403_v11 = vpop.f32.mrb[7].mxu1  ;;  %902 = vmax.xlane.f32.xlu0 %v901_v9  ;;  %v1280_v12 = vsel %vm900_vm4, %v2401_v10, -inf  ;;  %v2407_v13 = vpop.f32.mrb[13].mxu0  ;;  %v910_v16 = vsel %vm900_vm4, %v2397_v8, -inf }
 0x24c   : > { %v2409_v14 = vpop.f32.mrb[14].mxu0  ;;  %v1274_v18 = vsel %vm900_vm4, %v2407_v13, -inf  ;;  %v904_v32 = vsel %vm900_vm4, %v2403_v11, -inf }
 0x24d   : > { %v2411_v15 = vpop.f32.mrb[15].mxu0  ;;  %v1283_v36 = vsel %vm900_vm4, %v2409_v14, -inf }
 0x24e   : > { %1281 = vmax.xlane.f32.xlu1 %v1280_v12  ;;  %v1277_v17 = vsel %vm900_vm4, %v2411_v15, -inf }
 0x24f   : > { %911 = vmax.xlane.f32.xlu0 %v910_v16 }
 0x250   : > { %v2419_v19 = vpop.f32.mrb[8].mxu1 }
 0x251   : > { %v2421_v20 = vpop.f32.mrb[9].mxu1  ;;  %v919_v23 = vsel %vm900_vm4, %v2419_v19, -inf }
 0x252   : > { %1278 = vmax.xlane.f32.xlu1 %v1277_v17  ;;  %v2423_v21 = vpop.f32.mrb[10].mxu1  ;;  %v2425_v22 = vpop.f32.mrb[16].mxu0  ;;  %v913_v33 = vsel %vm900_vm4, %v2421_v20, -inf }
 0x253   : > { %1275 = vmax.xlane.f32.xlu0 %v1274_v18  ;;  %v2429_v24 = vpop.f32.mrb[11].mxu1  ;;  %v2431_v25 = vpop.f32.mrb[17].mxu0  ;;  %v1292_v39 = vsel %vm900_vm4, %v2425_v22, -inf  ;;  %v922_v45 = vsel %vm900_vm4, %v2423_v21, -inf }
 0x254   : > { %v2433_v30 = vpop.f32.mrb[18].mxu0  ;;  %v1286_v46 = vsel %vm900_vm4, %v2431_v25, -inf  ;;  %v916_v51 = vsel %vm900_vm4, %v2429_v24, -inf }
 0x255   : > { %v2435_v31 = vpop.f32.mrb[19].mxu0  ;;  %v1295_v59 = vsel %vm900_vm4, %v2433_v30, -inf }
 0x256   : > { %920 = vmax.xlane.f32.xlu1 %v919_v23  ;;  %v1289_v61 = vsel %vm900_vm4, %v2435_v31, -inf }
 0x257   : > { %905 = vmax.xlane.f32.xlu0 %v904_v32 }
 0x258   : > { %v2441_v34 = vpop.f32.mrb[12].mxu1 }
 0x259   : > { %v2443_v35 = vpop.f32.mrb[13].mxu1  ;;  %v931_v54 = vsel %vm900_vm4, %v2441_v34, -inf }
 0x25a   : > { %914 = vmax.xlane.f32.xlu1 %v913_v33  ;;  %v2447_v37 = vpop.f32.mrb[14].mxu1  ;;  %v2449_v38 = vpop.f32.mrb[20].mxu0  ;;  %v925_v60 = vsel %vm900_vm4, %v2443_v35, -inf  ;;  %v481_v33 = vld [vmem:[%s2727_s7] sm:$0xff] }
 0x25b   : > { %1284 = vmax.xlane.f32.xlu0 %v1283_v36  ;;  %v2453_v40 = vpop.f32.mrb[15].mxu1  ;;  %v2455_v41 = vpop.f32.mrb[21].mxu0  ;;  %v1304_v62 = vsel %vm900_vm4, %v2449_v38, -inf  ;;  %v934_v63 = vsel %vm900_vm4, %v2447_v37, -inf  ;;  %v482_v36 = vld [vmem:[%s2727_s7 + $0x8] sm:$0xff] }
 0x25c   : > { %v2457_v42 = vpop.f32.mrb[22].mxu0  ;;  %v1298_v1 = vsel %vm900_vm4, %v2455_v41, -inf  ;;  %v928_v2 = vsel %vm900_vm4, %v2453_v40, -inf }
 0x25d   : > { %v2459_v43 = vpop.f32.mrb[23].mxu0  ;;  %v1307_v4 = vsel %vm900_vm4, %v2457_v42, -inf }
 0x25e   : > { %1293 = vmax.xlane.f32.xlu1 %v1292_v39  ;;  %v1301_v9 = vsel %vm900_vm4, %v2459_v43, -inf  ;;  %v488_v39 = vld [vmem:[%s2727_s7 + $0x38] sm:$0xff] }
 0x25f   : > { %923 = vmax.xlane.f32.xlu0 %v922_v45  ;;  %v484_v45 = vld [vmem:[%s2727_s7 + $0x18] sm:$0xff] }
 0x260   : > { %v2465_v49 = vpop.f32.mrb[16].mxu1 }
 0x261   : > { %v2467_v50 = vpop.f32.mrb[17].mxu1  ;;  %v943_v3 = vsel %vm900_vm4, %v2465_v49, -inf }
 0x262   : > { %1287 = vmax.xlane.f32.xlu1 %v1286_v46  ;;  %v2471_v52 = vpop.f32.mrb[18].mxu1  ;;  %v2473_v53 = vpop.f32.mrb[24].mxu0  ;;  %v937_v7 = vsel %vm900_vm4, %v2467_v50, -inf  ;;  %v486_v46 = vld [vmem:[%s2727_s7 + $0x28] sm:$0xff] }
 0x263   : > { %917 = vmax.xlane.f32.xlu0 %v916_v51  ;;  %v2477_v55 = vpop.f32.mrb[19].mxu1  ;;  %v2479_v56 = vpop.f32.mrb[25].mxu0  ;;  %v1316_v12 = vsel %vm900_vm4, %v2473_v53, -inf  ;;  %v946_v16 = vsel %vm900_vm4, %v2471_v52, -inf  ;;  %v487_v51 = vld [vmem:[%s2727_s7 + $0x30] sm:$0xff] }
 0x264   : > { %v2481_v57 = vpop.f32.mrb[26].mxu0  ;;  %v1310_v17 = vsel %vm900_vm4, %v2479_v56, -inf  ;;  %v940_v18 = vsel %vm900_vm4, %v2477_v55, -inf }
 0x265   : > { %v2483_v58 = vpop.f32.mrb[27].mxu0  ;;  %v1319_v23 = vsel %vm900_vm4, %v2481_v57, -inf }
 0x266   : > { %932 = vmax.xlane.f32.xlu1 %v931_v54  ;;  %v1313_v32 = vsel %vm900_vm4, %v2483_v58, -inf  ;;  %v483_v54 = vld [vmem:[%s2727_s7 + $0x10] sm:$0xff] }
 0x267   : > { %1296 = vmax.xlane.f32.xlu0 %v1295_v59  ;;  %v1584_v59 = vld [vmem:[%s2729_s9] sm:$0xff] }
 0x26a   : > { %926 = vmax.xlane.f32.xlu1 %v925_v60  ;;  %v653_v60 = vld [vmem:[#allocation3 + $0x10] sm:$0x1] }
 0x26b   : > { %1290 = vmax.xlane.f32.xlu0 %v1289_v61  ;;  %v654_v61 = vsel %vm652_vm7, 1065369472, %v653_v60 }
 0x26c   : > { %655 = vst [vmem:[#allocation3 + $0x10] sm:$0x1] %v654_v61 }
 0x26e   : > { %1305 = vmax.xlane.f32.xlu1 %v1304_v62  ;;  %v681_v62 = vld [vmem:[#allocation3 + $0x24] sm:$0x1] }
 0x26f   : > { %935 = vmax.xlane.f32.xlu0 %v934_v63  ;;  %v682_v63 = vsel %vm652_vm7, 1065369472, %v681_v62 }
 0x270   : > { %683 = vst [vmem:[#allocation3 + $0x24] sm:$0x1] %v682_v63 }
 0x272   : > { %1299 = vmax.xlane.f32.xlu1 %v1298_v1 }
 0x273   : > { %929 = vmax.xlane.f32.xlu0 %v928_v2 }
 0x276   : > { %944 = vmax.xlane.f32.xlu1 %v943_v3 }
 0x277   : > { %1308 = vmax.xlane.f32.xlu0 %v1307_v4 }
 0x27a   : > { %938 = vmax.xlane.f32.xlu1 %v937_v7 }
 0x27b   : > { %1302 = vmax.xlane.f32.xlu0 %v1301_v9 }
 0x27e   : > { %1317 = vmax.xlane.f32.xlu1 %v1316_v12 }
 0x27f   : > { %947 = vmax.xlane.f32.xlu0 %v946_v16 }
 0x282   : > { %1311 = vmax.xlane.f32.xlu1 %v1310_v17 }
 0x283   : > { %941 = vmax.xlane.f32.xlu0 %v940_v18 }
 0x287   : > { %1320 = vmax.xlane.f32.xlu0 %v1319_v23 }
 0x28b   : > { %1314 = vmax.xlane.f32.xlu0 %v1313_v32 }
 0x293   : > { %491 = vperm.xlu1 %2013, %v481_v33  }
 0x297   : > { %496 = vperm.xlu1 %2013, %v482_v36  }
 0x29b   : > { %526 = vperm.xlu1 %2013, %v488_v39  }
 0x29f   : > { %506 = vperm.xlu1 %2013, %v484_v45  }
 0x2a1   : > { %516 = vperm.xlu0 %2012, %v486_v46  }
 0x2a5   : > { %521 = vperm.xlu0 %2012, %v487_v51  }
 0x2a9   : > { %501 = vperm.xlu0 %2012, %v483_v54  }
 0x2ad   : > { %1587 = vperm.xlu0 %2012, %v1584_v59  }
 0x2d7   : > { %v909_v1 = vpop.xlane.xlu1 %908 }
 0x2d8   : > { %v951_v2 = vsub.f32 %v2391_v5, %v909_v1  ;;  %v903_v3 = vpop.xlane.xlu0 %902 }
 0x2d9   : > { %v949_v18 = vsub.f32 %v2393_v6, %v903_v3 }
 0x2da   : > { %v969_v7 = vmul.f32 1.442695, %v951_v2 }
 0x2db   : > { %v1282_v4 = vpop.xlane.xlu1 %1281  ;;  %v965_v45 = vmul.f32 1.442695, %v949_v18 }
 0x2dc   : > { %v912_v9 = vpop.xlane.xlu0 %911  ;;  %2026 = vpow2.f32 %v969_v7  ;;  %v1324_v46 = vsub.f32 %v2401_v10, %v1282_v4 }
 0x2dd   : > { %v952_v12 = vsub.f32 %v2397_v8, %v912_v9 }
 0x2de   : > { %v1342_v6 = vmul.f32 1.442695, %v1324_v46 }
 0x2df   : > { %v971_v16 = vmul.f32 1.442695, %v952_v12  ;;  %v1279_v17 = vpop.xlane.xlu1 %1278 }
 0x2e0   : > { %v1323_v23 = vsub.f32 %v2411_v15, %v1279_v17  ;;  %v1276_v32 = vpop.xlane.xlu0 %1275 }
 0x2e1   : > { %2028 = vpow2.f32 %v971_v16  ;;  %v1322_v33 = vsub.f32 %v2407_v13, %v1276_v32 }
 0x2e2   : > { %v1340_v36 = vmul.f32 1.442695, %v1323_v23 }
 0x2e3   : > { %v1338_v39 = vmul.f32 1.442695, %v1322_v33  ;;  %v921_v5 = vpop.xlane.xlu1 %920 }
 0x2e4   : > { %2030 = vpow2.f32 %v1340_v36  ;;  %v906_v51 = vpop.xlane.xlu0 %905  ;;  %v955_v15 = vsub.f32 %v2419_v19, %v921_v5 }
 0x2e5   : > { %2032 = vpow2.f32 %v1338_v39  ;;  %v950_v8 = vsub.f32 %v2403_v11, %v906_v51 }
 0x2e6   : > { %2034 = vpow2.f32 %v965_v45  ;;  %v2552_v61 = vpop.eup %2026  ;;  %v977_v1 = vmul.f32 1.442695, %v955_v15 }
 0x2e7   : > { %v967_v54 = vmul.f32 1.442695, %v950_v8  ;;  %v915_v59 = vpop.xlane.xlu1 %914 }
 0x2e8   : > { %v1285_v60 = vpop.xlane.xlu0 %1284  ;;  %v953_v11 = vsub.f32 %v2421_v20, %v915_v59 }
 0x2e9   : > { %2036 = vpow2.f32 %v967_v54  ;;  %v1325_v13 = vsub.f32 %v2409_v14, %v1285_v60 }
 0x2ea   : > { %2038 = vpow2.f32 %v1342_v6  ;;  %v973_v12 = vmul.f32 1.442695, %v953_v11 }
 0x2eb   : > { %v2554_v62 = vpop.eup %2028  ;;  %v1344_v10 = vmul.f32 1.442695, %v1325_v13  ;;  %v1294_v63 = vpop.xlane.xlu1 %1293 }
 0x2ec   : > { %v924_v2 = vpop.xlane.xlu0 %923  ;;  %v998_v3 = vpack.c.bf16 %v2554_v62, %v2552_v61  ;;  %v1328_v16 = vsub.f32 %v2425_v22, %v1294_v63 }
 0x2ed   : > { %2040 = vpow2.f32 %v1344_v10  ;;  %v956_v19 = vsub.f32 %v2423_v21, %v924_v2 }
 0x2ee   : > { %v2031_v4 = vpop.eup %2030  ;;  %2042 = vpow2.f32 %v977_v1  ;;  %v1350_v39 = vmul.f32 1.442695, %v1328_v16 }
 0x2ef   : > { %v2033_v7 = vpop.eup %2032  ;;  %v979_v14 = vmul.f32 1.442695, %v956_v19  ;;  %v1288_v9 = vpop.xlane.xlu1 %1287 }
 0x2f0   : > { %v918_v17 = vpop.xlane.xlu0 %917  ;;  %v1370_v18 = vpack.c.bf16 %v2031_v4, %v2033_v7  ;;  %v2035_v23 = vpop.eup %2034  ;;  %v1326_v5 = vsub.f32 %v2431_v25, %v1288_v9  ;;  %v1031_v4 = vsel %vm900_vm4, %v998_v3, 0 }
 0x2f1   : > { %2044 = vpow2.f32 %v979_v14  ;;  %v954_v20 = vsub.f32 %v2429_v24, %v918_v17 }
 0x2f2   : > { %v1401_v32 = vsel %vm900_vm4, %v1370_v18, 0  ;;  %2046 = vpow2.f32 %v973_v12  ;;  %v1346_v6 = vmul.f32 1.442695, %v1326_v5 }
 0x2f3   : > { %v2037_v33 = vpop.eup %2036  ;;  %v975_v36 = vmul.f32 1.442695, %v954_v20  ;;  %1905 = vmatpush3.bf16.xpose.msra.mxu0 %v1401_v32  ;;  %v933_v21 = vpop.xlane.xlu1 %932 }
 0x2f4   : > { %v1297_v45 = vpop.xlane.xlu0 %1296  ;;  %v997_v46 = vpack.c.bf16 %v2037_v33, %v2035_v23  ;;  %1906 = vmatprep.subr.bf16.mxu0 %v2174_v0  ;;  %v2039_v51 = vpop.eup %2038  ;;  %v959_v15 = vsub.f32 %v2441_v34, %v933_v21 }
 0x2f5   : > { %2048 = vpow2.f32 %v975_v36  ;;  %v1329_v22 = vsub.f32 %v2433_v30, %v1297_v45 }
 0x2f6   : > { %v1028_v24 = vsel %vm900_vm4, %v997_v46, 0  ;;  %2050 = vpow2.f32 %v1350_v39  ;;  %v985_v1 = vmul.f32 1.442695, %v959_v15 }
 0x2f7   : > { %v2041_v8 = vpop.eup %2040  ;;  %v1352_v54 = vmul.f32 1.442695, %v1329_v22  ;;  %1859 = vmatpush3.bf16.xpose.msra.mxu1 %v1028_v24  ;;  %v927_v59 = vpop.xlane.xlu1 %926 }
 0x2f8   : > { %v1291_v60 = vpop.xlane.xlu0 %1290  ;;  %v1371_v25 = vpack.c.bf16 %v2041_v8, %v2039_v51  ;;  %1860 = vmatprep.subr.bf16.mxu1 %v2174_v0  ;;  %v2570_v61 = vpop.eup %2042  ;;  %v957_v34 = vsub.f32 %v2443_v35, %v927_v59 }
 0x2f9   : > { %2052 = vpow2.f32 %v1352_v54  ;;  %v1327_v13 = vsub.f32 %v2435_v31, %v1291_v60 }
 0x2fa   : > { %v1404_v30 = vsel %vm900_vm4, %v1371_v25, 0  ;;  %2054 = vpow2.f32 %v1346_v6  ;;  %v981_v12 = vmul.f32 1.442695, %v957_v34 }
 0x2fb   : > { %v2573_v62 = vpop.eup %2044  ;;  %v1348_v10 = vmul.f32 1.442695, %v1327_v13  ;;  %1907 = vmatpush3.bf16.xpose.msra.mxu0 %v1404_v30  ;;  %v1306_v63 = vpop.xlane.xlu1 %1305 }
 0x2fc   : > { %v936_v11 = vpop.xlane.xlu0 %935  ;;  %1908 = vmatprep.subr.bf16.mxu0 %v2174_v0  ;;  %v1000_v2 = vpack.c.bf16 %v2573_v62, %v2570_v61  ;;  %v2047_v19 = vpop.eup %2046  ;;  %v1332_v35 = vsub.f32 %v2449_v38, %v1306_v63 }
 0x2fd   : > { %2056 = vpow2.f32 %v1348_v10  ;;  %v960_v31 = vsub.f32 %v2447_v37, %v936_v11 }
 0x2fe   : > { %2058 = vpow2.f32 %v985_v1  ;;  %v1358_v3 = vmul.f32 1.442695, %v1332_v35  ;;  %v1037_v30 = vsel %vm900_vm4, %v1000_v2, 0 }
 0x2ff   : > { %v2049_v7 = vpop.eup %2048  ;;  %v987_v14 = vmul.f32 1.442695, %v960_v31  ;;  %1861 = vmatpush3.bf16.xpose.msra.mxu1 %v1031_v4  ;;  %v1300_v9 = vpop.xlane.xlu1 %1299 }
 0x300   : > { %v930_v16 = vpop.xlane.xlu0 %929  ;;  %1862 = vmatprep.subr.bf16.mxu1 %v2174_v0  ;;  %v999_v17 = vpack.c.bf16 %v2049_v7, %v2047_v19  ;;  %v2051_v20 = vpop.eup %2050  ;;  %v1330_v33 = vsub.f32 %v2455_v41, %v1300_v9 }
 0x301   : > { %2060 = vpow2.f32 %v987_v14  ;;  %v958_v18 = vsub.f32 %v2453_v40, %v930_v16 }
 0x302   : > { %2062 = vpow2.f32 %v981_v12  ;;  %v1034_v5 = vsel %vm900_vm4, %v999_v17, 0  ;;  %v1354_v22 = vmul.f32 1.442695, %v1330_v33 }
 0x303   : > { %v2053_v37 = vpop.eup %2052  ;;  %v983_v23 = vmul.f32 1.442695, %v958_v18  ;;  %v945_v32 = vpop.xlane.xlu1 %944 }
 0x304   : > { %v1309_v36 = vpop.xlane.xlu0 %1308  ;;  %v1373_v21 = vpack.c.bf16 %v2053_v37, %v2051_v20  ;;  %v2055_v39 = vpop.eup %2054  ;;  %v963_v51 = vsub.f32 %v2465_v49, %v945_v32 }
 0x305   : > { %2064 = vpow2.f32 %v983_v23  ;;  %v1333_v38 = vsub.f32 %v2457_v42, %v1309_v36 }
 0x306   : > { %2066 = vpow2.f32 %v1358_v3  ;;  %v993_v49 = vmul.f32 1.442695, %v963_v51 }
 0x307   : > { %v2057_v45 = vpop.eup %2056  ;;  %v1360_v46 = vmul.f32 1.442695, %v1333_v38  ;;  %1863 = vmatpush3.bf16.xpose.msra.mxu1 %v1034_v5  ;;  %v939_v40 = vpop.xlane.xlu1 %938 }
 0x308   : > { %v1303_v24 = vpop.xlane.xlu0 %1302  ;;  %v1372_v8 = vpack.c.bf16 %v2057_v45, %v2055_v39  ;;  %1864 = vmatprep.subr.bf16.mxu1 %v2174_v0  ;;  %v2590_v54 = vpop.eup %2058  ;;  %v961_v6 = vsub.f32 %v2467_v50, %v939_v40 }
 0x309   : > { %2068 = vpow2.f32 %v1360_v46  ;;  %v1331_v41 = vsub.f32 %v2459_v43, %v1303_v24 }
 0x30a   : > { %v1407_v42 = vsel %vm900_vm4, %v1372_v8, 0  ;;  %2070 = vpow2.f32 %v1354_v22  ;;  %v989_v10 = vmul.f32 1.442695, %v961_v6 }
 0x30b   : > { %v2593_v59 = vpop.eup %2060  ;;  %v1356_v15 = vmul.f32 1.442695, %v1331_v41  ;;  %1909 = vmatpush3.bf16.xpose.msra.mxu0 %v1407_v42  ;;  %v1318_v60 = vpop.xlane.xlu1 %1317 }
 0x30c   : > { %v948_v25 = vpop.xlane.xlu0 %947  ;;  %1910 = vmatprep.subr.bf16.mxu0 %v2174_v0  ;;  %v1002_v13 = vpack.c.bf16 %v2593_v59, %v2590_v54  ;;  %v2063_v61 = vpop.eup %2062  ;;  %v1336_v1 = vsub.f32 %v2473_v53, %v1318_v60 }
 0x30d   : > { %2072 = vpow2.f32 %v1356_v15  ;;  %v964_v43 = vsub.f32 %v2471_v52, %v948_v25  ;;  %v1410_v52 = vsel %vm900_vm4, %v1373_v21, 0 }
 0x30e   : > { %2074 = vpow2.f32 %v993_v49  ;;  %v1366_v14 = vmul.f32 1.442695, %v1336_v1 }
 0x30f   : > { %v2065_v62 = vpop.eup %2064  ;;  %v995_v50 = vmul.f32 1.442695, %v964_v43  ;;  %1865 = vmatpush3.bf16.xpose.msra.mxu1 %v1037_v30  ;;  %v1312_v63 = vpop.xlane.xlu1 %1311 }
 0x310   : > { %v942_v34 = vpop.xlane.xlu0 %941  ;;  %1866 = vmatprep.subr.bf16.mxu1 %v2174_v0  ;;  %v1001_v11 = vpack.c.bf16 %v2065_v62, %v2063_v61  ;;  %v2067_v19 = vpop.eup %2066  ;;  %v1334_v9 = vsub.f32 %v2479_v56, %v1312_v63 }
 0x311   : > { %2076 = vpow2.f32 %v995_v50  ;;  %v962_v31 = vsub.f32 %v2477_v55, %v942_v34 }
 0x312   : > { %2078 = vpow2.f32 %v989_v10  ;;  %v1040_v18 = vsel %vm900_vm4, %v1001_v11, 0  ;;  %v1362_v32 = vmul.f32 1.442695, %v1334_v9 }
 0x313   : > { %v2069_v4 = vpop.eup %2068  ;;  %v991_v2 = vmul.f32 1.442695, %v962_v31  ;;  %1911 = vmatpush3.bf16.xpose.msra.mxu0 %v1410_v52  ;;  %v492_v7 = vpop.permute.xlu1 %491  ;;  %v2024_v31 = vld [vmem:[#allocation3 + $0x10] ss:$0 sps:$4 sm:$0x11]  }
 0x314   : > { %v596_v53 = vadd.f32 %v2349_v27, %v492_v7  ;;  %v1321_v12 = vpop.xlane.xlu0 %1320  ;;  %1912 = vmatprep.subr.bf16.mxu0 %v2174_v0  ;;  %v1375_v35 = vpack.c.bf16 %v2069_v4, %v2067_v19  ;;  %v2071_v16 = vpop.eup %2070  ;;  %v2025_v19 = vld [vmem:[#allocation3 + $0x24] ss:$0 sps:$4 sm:$0x11]  }
 0x315   : > { %2080 = vpow2.f32 %v991_v2  ;;  %v1337_v55 = vsub.f32 %v2481_v57, %v1321_v12 }
 0x316   : > { %v1754_v17 = vpack.c.bf16 %v596_v53, %v596_v53  ;;  %2082 = vpow2.f32 %v1366_v14  ;;  %v1416_v15 = vsel %vm900_vm4, %v1375_v35, 0 }
 0x317   : > { %v2073_v20 = vpop.eup %2072  ;;  %v1368_v37 = vmul.f32 1.442695, %v1337_v55  ;;  %1867 = vmatpush3.bf16.xpose.msra.mxu1 %v1040_v18  ;;  %v497_v23 = vpop.permute.xlu1 %496 }
 0x318   : > { %646 = vst.msk [vmem:[#allocation3] sm:$0xf] %vm630_vm3, %v1754_v17  ;;  %v599_v27 = vadd.f32 %v2353_v29, %v497_v23  ;;  %v1315_v56 = vpop.xlane.xlu0 %1314  ;;  %v1374_v3 = vpack.c.bf16 %v2073_v20, %v2071_v16  ;;  %1868 = vmatprep.subr.bf16.mxu1 %v2174_v0  ;;  %v2075_v33 = vpop.eup %2074 }
 0x319   : > { %2084 = vpow2.f32 %v1368_v37  ;;  %v1335_v57 = vsub.f32 %v2483_v58, %v1315_v56  ;;  %v1043_v58 = vsel %vm900_vm4, %v1002_v13, 0 }
 0x31a   : > { %v1755_v36 = vpack.c.bf16 %v599_v27, %v599_v27  ;;  %v1413_v21 = vsel %vm900_vm4, %v1374_v3, 0  ;;  %2086 = vpow2.f32 %v1362_v32  ;;  %v1108_v27 = vlaneseq }
 0x31b   : > { %v2077_v38 = vpop.eup %2076  ;;  %v1364_v39 = vmul.f32 1.442695, %v1335_v57  ;;  %1913 = vmatpush3.bf16.xpose.msra.mxu0 %v1413_v21  ;;  %v527_v5 = vpop.permute.xlu1 %526 }
 0x31c   : > { %647 = vst.msk [vmem:[#allocation3 + $0x4] sm:$0xf] %vm630_vm3, %v1755_v36  ;;  %v623_v29 = vadd.f32 %v2366_v47, %v527_v5  ;;  %1914 = vmatprep.subr.bf16.mxu0 %v2174_v0  ;;  %v1004_v45 = vpack.c.bf16 %v2077_v38, %v2075_v33  ;;  %v2079_v46 = vpop.eup %2078  ;;  %v1109_v33 = vshrl.u32 %v1108_v27, 7 }
 0x31d   : > { %2088 = vpow2.f32 %v1364_v39 }
 0x31e   : > { %v1762_v40 = vpack.c.bf16 %v623_v29, %v623_v29  ;;  %v1110_v5 = vsub.s32 0, %v1109_v33 }
 0x31f   : > { %v2081_v22 = vpop.eup %2080  ;;  %1869 = vmatpush3.bf16.xpose.msra.mxu1 %v1043_v58  ;;  %v507_v51 = vpop.permute.xlu1 %506 }
 0x320   : > { %680 = vst.msk [vmem:[#allocation3 + $0x20] sm:$0xf] %vm630_vm3, %v1762_v40  ;;  %v607_v24 = vadd.f32 %v2351_v28, %v507_v51  ;;  %v517_v8 = vpop.permute.xlu0 %516  ;;  %1870 = vmatprep.subr.bf16.mxu1 %v2174_v0  ;;  %v1003_v47 = vpack.c.bf16 %v2081_v22, %v2079_v46  ;;  %v2083_v42 = vpop.eup %2082 }
 0x321   : > { %v615_v41 = vadd.f32 %v2368_v48, %v517_v8 }
 0x322   : > { %v1757_v6 = vpack.c.bf16 %v607_v24, %v607_v24  ;;  %v1046_v48 = vsel %vm900_vm4, %v1003_v47, 0 }
 0x323   : > { %v2085_v54 = vpop.eup %2084  ;;  %v1760_v59 = vpack.c.bf16 %v615_v41, %v615_v41  ;;  %1915 = vmatpush3.bf16.xpose.msra.mxu0 %v1416_v15  ;;  %v2020_v1 = vld [vmem:[#allocation3] sm:$0xff]  }
 0x324   : > { %649 = vst.msk [vmem:[#allocation3 + $0xc] sm:$0xf] %vm630_vm3, %v1757_v6  ;;  %v522_v60 = vpop.permute.xlu0 %521  ;;  %1916 = vmatprep.subr.bf16.mxu0 %v2174_v0  ;;  %v1377_v49 = vpack.c.bf16 %v2085_v54, %v2083_v42  ;;  %v2087_v25 = vpop.eup %2086 }
 0x325   : > { %678 = vst.msk [vmem:[#allocation3 + $0x18] sm:$0xf] %vm630_vm3, %v1760_v59  ;;  %v620_v28 = vadd.f32 %v2361_v44, %v522_v60  ;;  %v1049_v44 = vsel %vm900_vm4, %v1004_v45, 0 }
 0x326   : > { %v1422_v63 = vsel %vm900_vm4, %v1377_v49, 0 }
 0x327   : > { %v2089_v13 = vpop.eup %2088  ;;  %v1761_v43 = vpack.c.bf16 %v620_v28, %v620_v28  ;;  %1871 = vmatpush3.bf16.xpose.msra.mxu1 %v1046_v48 }
 0x328   : > { %v502_v61 = vpop.permute.xlu0 %501  ;;  %v1376_v30 = vpack.c.bf16 %v2089_v13, %v2087_v25  ;;  %1872 = vmatprep.subr.bf16.mxu1 %v2174_v0 }
 0x329   : > { %679 = vst.msk [vmem:[#allocation3 + $0x1c] sm:$0xf] %vm630_vm3, %v1761_v43  ;;  %v604_v62 = vadd.f32 %v2347_v26, %v502_v61 }
 0x32a   : > { %v1419_v10 = vsel %vm900_vm4, %v1376_v30, 0  ;;  %v1747_v30 = vld [vmem:[%s2728_s8 + $0x4] sm:$0xf] }
 0x32b   : > { %v1756_v50 = vpack.c.bf16 %v604_v62, %v604_v62  ;;  %1917 = vmatpush3.bf16.xpose.msra.mxu0 %v1419_v10  ;;  %v1122_v62 = vld [vmem:[%s2728_s8] sm:$0xf] }
 0x32c   : > { %1918 = vmatprep.subr.bf16.mxu0 %v2174_v0  ;;  %v2021_v26 = vld [vmem:[#allocation3 + $0x14] sm:$0xff]  }
 0x32d   : > { %648 = vst.msk [vmem:[#allocation3 + $0x8] sm:$0xf] %vm630_vm3, %v1756_v50 }
 0x32f   : > { %1873 = vmatpush3.bf16.xpose.msra.mxu1 %v1049_v44 }
 0x330   : > { %1932 = vmatprep.subr.bf16.mxu1 %v2174_v0  ;;  %v2023_v11 = vld [vmem:[#allocation3 + $0x1c] sm:$0xff]  }
 0x333   : > { %1919 = vmatpush3.bf16.xpose.msra.mxu0 %v1422_v63 }
 0x334   : > { %v2022_v34 = vld [vmem:[#allocation3 + $0x8] sm:$0xff]  }
 0x336   : > { %1875 = vmatmul.mubr.msk.bf16.vlgmr.msra.gmra.mrb[20].mxu1 %vm900_vm4, %v2020_v1 }
 0x337   : > { %1878 = vmatprep.mubr.msk.bf16.mxu1 %vm2175_vm0, %v2174_v0 }
 0x33a   : > { %1921 = vmatmul.mubr.msk.bf16.vlgmr.msra.gmra.mrb[28].mxu0 %vm900_vm4, %v2021_v26 }
 0x33b   : > { %1924 = vmatprep.mubr.msk.bf16.mxu0 %vm2175_vm0, %v2174_v0 }
 0x33e   : > { %1879 = vmatmul.mubr.msk.bf16.gmra.mrb[24].mxu1 %vm900_vm4, %v2022_v34 }
 0x33f   : > { %1882 = vmatprep.mubr.msk.bf16.mxu1 %vm2175_vm0, %v2174_v0 }
 0x342   : > { %1925 = vmatmul.mubr.msk.bf16.gmra.mrb[32].mxu0 %vm900_vm4, %v2023_v11 }
 0x343   : > { %1928 = vmatprep.mubr.msk.bf16.mxu0 %vm2175_vm0, %v2174_v0 }
 0x346   : > { %1883 = vmatmul.mubr.msk.bf16.gmra.mrb[28].mxu1 %vm900_vm4, %v2024_v31 }
 0x347   : > { %1936 = vmatprep.mubr.msk.bf16.mxu1 %vm2175_vm0, %v2174_v0 }
 0x34a   : > { %1929 = vmatmul.mubr.msk.bf16.gmra.mrb[36].mxu0 %vm900_vm4, %v2025_v19 }
 0x409   : > { %v1085_v52 = vpop.f32.mrb[20].mxu1 }
 0x40a   : > { %v1876_v4 = vpop.f32.mrb[21].mxu1 }
 0x40b   : > { %v1088_v2 = vpop.f32.mrb[22].mxu1 }
 0x40c   : > { %v1877_v7 = vpop.f32.mrb[23].mxu1 }
 0x40d   : > { %v1458_v14 = vpop.f32.mrb[28].mxu0 }
 0x40e   : > { %v1922_v9 = vpop.f32.mrb[29].mxu0 }
 0x40f   : > { %v1461_v53 = vpop.f32.mrb[30].mxu0 }
 0x410   : > { %v1923_v12 = vpop.f32.mrb[31].mxu0 }
 0x411   : > { %v1093_v35 = vpop.f32.mrb[24].mxu1 }
 0x412   : > { %v1880_v55 = vpop.f32.mrb[25].mxu1 }
 0x413   : > { %v1096_v16 = vpop.f32.mrb[26].mxu1 }
 0x414   : > { %v1881_v17 = vpop.f32.mrb[27].mxu1 }
 0x415   : > { %v1466_v18 = vpop.f32.mrb[32].mxu0 }
 0x416   : > { %v1926_v20 = vpop.f32.mrb[33].mxu0 }
 0x417   : > { %v1469_v37 = vpop.f32.mrb[34].mxu0 }
 0x418   : > { %v1927_v23 = vpop.f32.mrb[35].mxu0 }
 0x419   : > { %v1101_v32 = vpop.f32.mrb[28].mxu1 }
 0x41a   : > { %2090 = vrcp.f32 %v1101_v32  ;;  %v1884_v56 = vpop.f32.mrb[29].mxu1 }
 0x41b   : > { %v1104_v3 = vpop.f32.mrb[30].mxu1 }
 0x41c   : > { %v1885_v57 = vpop.f32.mrb[31].mxu1 }
 0x41d   : > { %v1474_v36 = vpop.f32.mrb[36].mxu0 }
 0x41e   : > { %2092 = vrcp.f32 %v1474_v36  ;;  %v1930_v21 = vpop.f32.mrb[37].mxu0 }
 0x41f   : > { %v1477_v38 = vpop.f32.mrb[38].mxu0 }
 0x420   : > { %v1931_v39 = vpop.f32.mrb[39].mxu0 }
 0x424   : > { %v2091_v29 = vpop.eup %2090 }
 0x425   : > { %v1111_v45 = vrot.slane %v2091_v29, %v1110_v5 }
 0x427   : > { %v1112_v46 = vmul.f32 %v1111_v45, %v1085_v52  ;;  %v1113_v40 = vmul.f32 %v1111_v45, %v1088_v2  ;;  %v1114_v58 = vmul.f32 %v1111_v45, %v1093_v35  ;;  %v1115_v22 = vmul.f32 %v1111_v45, %v1096_v16 }
 0x428   : > { %v2093_v51 = vpop.eup %2092 }
 0x429   : > { %v1484_v24 = vrot.slane %v2093_v51, %v1110_v5  ;;  %v1116_v8 = vmax.f32 %v1112_v46, 0.0  ;;  %v1117_v47 = vmax.f32 %v1113_v40, 0.0  ;;  %v1118_v41 = vmax.f32 %v1114_v58, 0.0 }
 0x42a   : > { %v1119_v42 = vmax.f32 %v1115_v22, 0.0 }
 0x42b   : > { %v1485_v6 = vmul.f32 %v1484_v24, %v1458_v14  ;;  %v1486_v15 = vmul.f32 %v1484_v24, %v1461_v53  ;;  %v1487_v54 = vmul.f32 %v1484_v24, %v1466_v18  ;;  %v1488_v59 = vmul.f32 %v1484_v24, %v1469_v37 }
 0x42c   : > { %v1120_v60 = vpack.c.bf16 %v1117_v47, %v1116_v8  ;;  %v1121_v49 = vpack.c.bf16 %v1119_v42, %v1118_v41 }
 0x42d   : > { %v1489_v28 = vmax.f32 %v1485_v6, 0.0  ;;  %v1490_v25 = vmax.f32 %v1486_v15, 0.0  ;;  %v1491_v48 = vmax.f32 %v1487_v54, 0.0  ;;  %v1492_v13 = vmax.f32 %v1488_v59, 0.0 }
 0x42f   : > { %v1493_v43 = vpack.c.bf16 %v1490_v25, %v1489_v28  ;;  %v1494_v61 = vpack.c.bf16 %v1492_v13, %v1491_v48 }
 0x431   : > { %1933 = vmatpush3.bf16.msra.mxu1 %v1493_v43 }
 0x432   : > { %1934 = vmatprep.subr.bf16.mxu1 %v2174_v0 }
 0x435   : > { %1935 = vmatpush3.bf16.msra.mxu1 %v1494_v61 }
 0x436   : > { %1940 = vmatprep.subr.bf16.mxu1 %v2174_v0 }
 0x438   : > { %1937 = vmatmul.mubr.msk.bf16.vlgmr.msra.gmra.mrb[32].mxu1 %vm1497_vm8, %v1747_v30 }
 0x439   : > { %1941 = vmatpush3.bf16.msra.mxu1 %v1120_v60  ;;  %1944 = vmatprep.mubr.msk.bf16.mxu1 %vm2175_vm0, %v2174_v0 }
 0x43a   : > { %1942 = vmatprep.subr.bf16.mxu1 %v2174_v0  ;;  %v1588_v0 = vpop.permute.xlu0 %1587 }
 0x43d   : > { %1943 = vmatpush3.bf16.msra.mxu1 %v1121_v49 }
 0x440   : > { %1945 = vmatmul.mubr.msk.bf16.vlgmr.msra.gmra.mrb[36].mxu1 %vm1497_vm8, %v1122_v62 }
 0x50b   : > { %v1535_v10 = vpop.f32.mrb[32].mxu1 }
 0x50c   : > { %v1938_v50 = vpop.f32.mrb[33].mxu1 }
 0x50d   : > { %v1538_v44 = vpop.f32.mrb[34].mxu1 }
 0x50e   : > { %v1939_v63 = vpop.f32.mrb[35].mxu1 }
 0x513   : > { %v1578_v1 = vpop.f32.mrb[36].mxu1 }
 0x514   : > { %v1579_v26 = vadd.f32 %v1578_v1, %v1535_v10  ;;  %v1946_v34 = vpop.f32.mrb[37].mxu1 }
 0x515   : > { %v1581_v11 = vpop.f32.mrb[38].mxu1 }
 0x516   : > { %v1590_v31 = vadd.f32 %v1588_v0, %v1579_v26  ;;  %v1947_v19 = vpop.f32.mrb[39].mxu1 }
 0x518   : > { %1591 = vst [vmem:[%s385_s21] sm:$0xff] %v1590_v31 }
 0x519   : > { %2107 = shalt.err (!%p2104_p5)
}
 0x51a   : > { %s2108_s28 = scalar_lea.hbm %s2673_s22, 128  ;;  %s2112_s21 = scalar_lea.hbm %s2730_s10, 256 }
 0x51b   : > { %p2109_p6 = scmp.ne.s32.totalorder %s2673_s22, %s2108_s28  ;;  %p2113_p10 = scmp.lt.u32.totalorder %s2673_s22, %s2730_s10 }
 0x51c   : > { %p2114_p11 = scmp.lt.u32.totalorder %s2112_s21, %s2108_s28  ;;  %p2116_p13 = scmp.lt.u32.totalorder %s2108_s28, %s2673_s22 }
 0x51d   : > { %p2110_p7 = pnand %p2109_p6, %p2273_p4 }
 0x51e   : > { %p2115_p12 = por %p2114_p11, %p2113_p10 }
 0x51f   : > { %p2111_p9 = pneg %p2110_p7 }
 0x520   : > { %p2117_p0 = por %p2116_p13, %p2115_p12 }
 0x522   : > { %p2118_p1 = pnand %p2117_p0, %p2111_p9 }
 0x524   : > { %2121 = shalt.err (!%p2118_p1)
}
 0x525   : > { %1954 = dma.vmem_to_hbm [thread:$0]  (%p2273_p4), %s2675_s20, 128, %s2673_s22, %s1593_s16  }
 0x526 PF: > { %p1960_p2 = scmp.ge.s32.totalorder %s2172_s18, 2  ;;  %s1619_s24 = sand.u32 1, %s2152_s13  }
 0x527   : > { %s1620_s27 = scalar_lea.sflag [#allocation5], %s1619_s24 }
 0x528   : > { %p1957_p3 = pnand %p1960_p2, %p2280_p8 }
 0x52a   : > { %2147 = dma.done.wait (!%p1957_p3), %s1620_s27, 128  }
 0x52b   : > { %2149 = vsyncadd (!%p1957_p3), %s1620_s27, 4294967168  ;;  %s23_s18 = sadd.s32 1, %s2172_s18   ;;  %s2737_s16 = sld [smem:[#allocation7_spill]] }
 0x52c   : > { %p20_p5 = scmp.ge.s32.totalorder %s23_s18, 4   ;;  %s2738_s17 = sld [smem:[#allocation8_spill]] }
 0x52d   : > { %s2739_s13 = smov %s2156_s14  ;;  %s2740_s14 = smov %s2160_s15 }
 0x52e   : > { %s2741_s15 = smov %s2286_s26  ;;  %22 = sbr.rel (!%p20_p5) target bundleno = 4 (0x4), region = 107 }
 0x535   :  { %1625 = vsyncpa [#allocation5], 1 }
 0x536   :  { %1627 = vsyncpa [#allocation5 + $0x1], 1 }

</bundles_post_ra>
